<compile_context>
chip_gen: v7x
topology: tpu7x:2x2x1
jax: 0.10.0
libtpu: 0.0.40
codegen_flags: <defaults>
</compile_context>

<pallas_src>
import jax
import jax.numpy as jnp
from jax.experimental import pallas as pl
from jax.experimental.pallas import tpu as pltpu

LANE = 128  # TPU lane width


def _attn_net_sigmoid_kernel(x_ref, w1_ref, b1_ref, w2_ref, b2_ref, a_ref):
    # x_ref: [TN, L] tile of instances (streamed); weights are VMEM-resident.
    x = x_ref[...]

    # Linear(L, D) + Sigmoid  (f32 accumulation on the MXU, exp on the EUP slot)
    h = jnp.dot(x, w1_ref[...], preferred_element_type=jnp.float32) + b1_ref[...]
    h = jax.nn.sigmoid(h)                                            # [TN, D] f32

    # Linear(D, C_pad)  (class dim pre-padded to a full lane width)
    a = jnp.dot(h, w2_ref[...], preferred_element_type=jnp.float32) + b2_ref[...]
    a_ref[...] = a.astype(a_ref.dtype)                               # [TN, C_pad]


def attn_net_sigmoid_forward(x, params, *, tile_n=256, use_bf16=False):
    """Returns (A, x) matching Attn_Net_attemp_sigmoid.forward."""
    N, L = x.shape
    D = params["w1"].shape[1]
    C = params["w2"].shape[1]

    # Pad the class dim up to a full 128-lane width -> lane-dense output stores.
    c_pad = ((C + LANE - 1) // LANE) * LANE
    w2 = params["w2"]
    b2 = params["b2"]
    if c_pad != C:
        w2 = jnp.pad(w2, ((0, 0), (0, c_pad - C)))
        b2 = jnp.pad(b2, ((0, 0), (0, c_pad - C)))

    # Pad N up to a tile multiple so ragged bags work; extra rows sliced off below.
    n_pad = pl.cdiv(N, tile_n) * tile_n

    # Optionally stream x / W1 as bf16 (halves HBM traffic); accumulation stays f32.
    in_dtype = jnp.bfloat16 if use_bf16 else jnp.float32
    x_k = x.astype(in_dtype)
    if n_pad != N:
        x_k = jnp.pad(x_k, ((0, n_pad - N), (0, 0)))
    w1 = params["w1"].astype(in_dtype)
    b1 = params["b1"].astype(jnp.float32)

    grid = (n_pad // tile_n,)
    itemsize = jnp.dtype(in_dtype).itemsize
    cost = pl.CostEstimate(
        flops=2 * n_pad * (L * D + D * c_pad),
        transcendentals=n_pad * D,                   # sigmoid -> exp on the EUP
        bytes_accessed=int((n_pad * L + L * D) * itemsize
                           + (D * c_pad + D + c_pad + n_pad * c_pad) * 4),
    )

    a_padded = pl.pallas_call(
        _attn_net_sigmoid_kernel,
        out_shape=jax.ShapeDtypeStruct((n_pad, c_pad), jnp.float32),
        grid_spec=pltpu.PrefetchScalarGridSpec(
            num_scalar_prefetch=0,
            grid=grid,
            in_specs=[
                pl.BlockSpec((tile_n, L), lambda i: (i, 0)),   # x: streamed per tile
                pl.BlockSpec((L, D), lambda i: (0, 0)),        # W1: resident
                pl.BlockSpec((1, D), lambda i: (0, 0)),        # b1: resident
                pl.BlockSpec((D, c_pad), lambda i: (0, 0)),    # W2: resident
                pl.BlockSpec((1, c_pad), lambda i: (0, 0)),    # b2: resident
            ],
            out_specs=pl.BlockSpec((tile_n, c_pad), lambda i: (i, 0)),
        ),
        compiler_params=pltpu.CompilerParams(
            dimension_semantics=("parallel",),       # tiles independent -> megacore OK
            vmem_limit_bytes=64 * 1024 * 1024,       # explicit budget, fits all gens
        ),
        cost_estimate=cost,
    )(x_k, w1, b1, w2, b2)

    A = a_padded[:N, :C]
    return A, x


def init_params(key, L, D, C):
    """Deterministic synthetic parameters; Linear weights stored as [in, out]."""
    ks = jax.random.split(key, 4)
    scale = 0.05
    return {
        "w1": scale * jax.random.normal(ks[0], (L, D), jnp.float32),
        "b1": scale * jax.random.normal(ks[1], (1, D), jnp.float32),
        "w2": scale * jax.random.normal(ks[2], (D, C), jnp.float32),
        "b2": scale * jax.random.normal(ks[3], (1, C), jnp.float32),
    }


def _reference_forward(x, p):
    h = jax.nn.sigmoid(x @ p["w1"] + p["b1"])
    return h @ p["w2"] + p["b2"]


if __name__ == "__main__":
    # Module defaults (L=1024, D=256, n_classes=1) with a modest bag of N=512
    # instances -> 4 grid tiles of 128, exercising the streaming pipeline.
    N, L, D, C = 512, 1024, 256, 1

    key = jax.random.PRNGKey(0)
    k_x, k_p = jax.random.split(key)
    x = jax.random.normal(k_x, (N, L), jnp.float32)
    params = init_params(k_p, L, D, C)

    A, x_out = attn_net_sigmoid_forward(x, params, tile_n=128, use_bf16=False)
    jax.block_until_ready((A, x_out))

    # Correctness check against a plain-JAX reference.
    ref_A = _reference_forward(x, params)
    assert A.shape == (N, C), f"bad A shape {A.shape}"
    assert x_out.shape == (N, L)
    assert jnp.allclose(A, ref_A, atol=2e-3, rtol=2e-3), "attention logits mismatch"
    assert jnp.allclose(x_out, x), "passthrough x mismatch"

    print("KERNEL_OK")
</pallas_src>

<mosaic_0001>
module attributes {stable_mosaic.version = 11 : i64} {
  func.func @_attn_net_sigmoid_kernel(%arg0: i32, %arg1: memref<128x1024xf32, #tpu.memory_space<vmem>>, %arg2: memref<1024x256xf32, #tpu.memory_space<vmem>>, %arg3: memref<1x256xf32, #tpu.memory_space<vmem>>, %arg4: memref<256x128xf32, #tpu.memory_space<vmem>>, %arg5: memref<1x128xf32, #tpu.memory_space<vmem>>, %arg6: memref<128x128xf32, #tpu.memory_space<vmem>>) attributes {dimension_semantics = [#tpu.dimension_semantics<parallel>], iteration_bounds = array<i64: 4>, scalar_prefetch = 0 : i64, scratch_operands = 0 : i64, tpu.core_type = #tpu.core_type<tc>, window_params = [{transform_indices = @transform_0, window_bounds = array<i64: 128, 1024>}, {pipeline_mode = #tpu.pipeline_mode<synchronous>, transform_indices = @transform_1, window_bounds = array<i64: 1024, 256>}, {pipeline_mode = #tpu.pipeline_mode<synchronous>, transform_indices = @transform_2, window_bounds = array<i64: 1, 256>}, {pipeline_mode = #tpu.pipeline_mode<synchronous>, transform_indices = @transform_3, window_bounds = array<i64: 256, 128>}, {pipeline_mode = #tpu.pipeline_mode<synchronous>, transform_indices = @transform_4, window_bounds = array<i64: 1, 128>}, {transform_indices = @transform_5, window_bounds = array<i64: 128, 128>}]} {
    %c0 = arith.constant 0 : index
    %c0_0 = arith.constant 0 : index
    %0 = vector.load %arg1[%c0, %c0_0] : memref<128x1024xf32, #tpu.memory_space<vmem>>, vector<128x1024xf32>
    %c0_1 = arith.constant 0 : index
    %c0_2 = arith.constant 0 : index
    %1 = vector.load %arg2[%c0_1, %c0_2] : memref<1024x256xf32, #tpu.memory_space<vmem>>, vector<1024x256xf32>
    %cst = arith.constant dense<0.000000e+00> : vector<128x256xf32>
    %2 = tpu.matmul %0, %1, %cst {dimension_numbers = #tpu.dot_dimension_numbers<[1], [0], [0], [1], [0, 0, 1, 1], [], []>} : vector<128x1024xf32>, vector<1024x256xf32>, vector<128x256xf32> -> vector<128x256xf32>
    %c0_3 = arith.constant 0 : index
    %c0_4 = arith.constant 0 : index
    %3 = vector.load %arg3[%c0_3, %c0_4] : memref<1x256xf32, #tpu.memory_space<vmem>>, vector<1x256xf32>
    %4 = vector.broadcast %3 : vector<1x256xf32> to vector<128x256xf32>
    %5 = arith.addf %2, %4 : vector<128x256xf32>
    %6 = arith.negf %5 : vector<128x256xf32>
    %7 = math.exp %6 : vector<128x256xf32>
    %cst_5 = arith.constant 1.000000e+00 : f32
    %8 = vector.broadcast %cst_5 : f32 to vector<128x256xf32>
    %9 = arith.addf %8, %7 : vector<128x256xf32>
    %10 = arith.divf %8, %9 : vector<128x256xf32>
    %c0_6 = arith.constant 0 : index
    %c0_7 = arith.constant 0 : index
    %11 = vector.load %arg4[%c0_6, %c0_7] : memref<256x128xf32, #tpu.memory_space<vmem>>, vector<256x128xf32>
    %cst_8 = arith.constant dense<0.000000e+00> : vector<128x128xf32>
    %12 = tpu.matmul %10, %11, %cst_8 {dimension_numbers = #tpu.dot_dimension_numbers<[1], [0], [0], [1], [0, 0, 1, 1], [], []>} : vector<128x256xf32>, vector<256x128xf32>, vector<128x128xf32> -> vector<128x128xf32>
    %c0_9 = arith.constant 0 : index
    %c0_10 = arith.constant 0 : index
    %13 = vector.load %arg5[%c0_9, %c0_10] : memref<1x128xf32, #tpu.memory_space<vmem>>, vector<1x128xf32>
    %14 = vector.broadcast %13 : vector<1x128xf32> to vector<128x128xf32>
    %15 = arith.addf %12, %14 : vector<128x128xf32>
    %c0_11 = arith.constant 0 : index
    %c0_12 = arith.constant 0 : index
    %16 = vector.load %arg6[%c0_11, %c0_12] : memref<128x128xf32, #tpu.memory_space<vmem>>, vector<128x128xf32>
    tpu.vector_store %arg6[%c0_11, %c0_12], %15 {strides = array<i32>} : memref<128x128xf32, #tpu.memory_space<vmem>>, vector<128x128xf32>,
    return
  }
  func.func @transform_0(%arg0: i32) -> (i32, i32) {
    %c0_i32 = arith.constant 0 : i32
    %c0_i32_0 = arith.constant 0 : i32
    return %arg0, %c0_i32 : i32, i32
  }
  func.func @transform_1(%arg0: i32) -> (i32, i32) {
    %c0_i32 = arith.constant 0 : i32
    %c0_i32_0 = arith.constant 0 : i32
    %c0_i32_1 = arith.constant 0 : i32
    return %c0_i32, %c0_i32_0 : i32, i32
  }
  func.func @transform_2(%arg0: i32) -> (i32, i32) {
    %c0_i32 = arith.constant 0 : i32
    %c0_i32_0 = arith.constant 0 : i32
    %c0_i32_1 = arith.constant 0 : i32
    return %c0_i32, %c0_i32_0 : i32, i32
  }
  func.func @transform_3(%arg0: i32) -> (i32, i32) {
    %c0_i32 = arith.constant 0 : i32
    %c0_i32_0 = arith.constant 0 : i32
    %c0_i32_1 = arith.constant 0 : i32
    return %c0_i32, %c0_i32_0 : i32, i32
  }
  func.func @transform_4(%arg0: i32) -> (i32, i32) {
    %c0_i32 = arith.constant 0 : i32
    %c0_i32_0 = arith.constant 0 : i32
    %c0_i32_1 = arith.constant 0 : i32
    return %c0_i32, %c0_i32_0 : i32, i32
  }
  func.func @transform_5(%arg0: i32) -> (i32, i32) {
    %c0_i32 = arith.constant 0 : i32
    %c0_i32_0 = arith.constant 0 : i32
    return %arg0, %c0_i32 : i32, i32
  }
}

</mosaic_0001>

<bundles_post_ra>
// kernel: tpu_custom_call.1
= control target key start
LH: loop header
LB: loop body
LE: loop exit
PB: predicated region body
PF: predicated region fallthrough
CT: control target
= control target key end

     0   :  { %10 = vsyncpa [#allocation3], 0  ;;  %s3651_s0 = inlined_call_operand.hbm [shape: f32[512,1024], index: 0, kind: input, shape index: {}]   ;;  %s3652_s1 = inlined_call_operand.hbm [shape: f32[1024,256], index: 1, kind: input, shape index: {}]   ;;  %s3653_s2 = inlined_call_operand.hbm [shape: f32[1,256], index: 2, kind: input, shape index: {}]   ;;  %s3654_s3 = inlined_call_operand.hbm [shape: f32[256,128], index: 3, kind: input, shape index: {}]   ;;  %s3655_s4 = inlined_call_operand.hbm [shape: f32[1,128], index: 4, kind: input, shape index: {}]   ;;  %s3656_s5 = inlined_call_operand.hbm [shape: f32[512,128], index: 5, kind: output, shape index: {}]  }
   0x1   :  { %12 = vsyncpa [#allocation3 + $0x1], 0 }
   0x2   :  { %13 = vsyncpa [#allocation6], 0 }
   0x3   :  { %14 = vsyncpa [#allocation9], 0 }
   0x4   :  { %15 = vsyncpa [#allocation4], 0 }
   0x5   :  { %17 = vsyncpa [#allocation4 + $0x1], 0  ;;  %s2929_s18 = smov 0   ;;  %s2931_s19 = smov 0  }
   0x6   :  { %s2933_s20 = smov 0   ;;  %s2935_s21 = smov 0  }
   0x7 LB: > { %s2950_s22 = sadd.s32 4294967295, %s2883_s21   ;;  %s1857_s23 = sadd.s32 4294967294, %s2883_s21   ;;  %s2883_s21 = sphi %s2935_s21, %s3678_s21   ;;  %s2879_s20 = sphi %s2933_s20, %s3677_s20   ;;  %s2875_s19 = sphi %s2931_s19, %s3676_s19   ;;  %s2871_s18 = sphi %s2929_s18, %s3675_s18  }
   0x8   : > { %p43_p0 = scmp.ne.s32.totalorder %s2875_s19, %s2871_s18  ;;  %p3657_p1 = scmp.eq.s32.totalorder %s2950_s22, 0 }
   0x9   : > { %p157_p3 = scmp.eq.s32.totalorder %s1857_s23, 3  ;;  %p1858_p5 = scmp.ge.s32.totalorder %s2883_s21, 1 }
   0xa   : > { %p2959_p4 = por %p3657_p1, %p43_p0  ;;  %p164_p7 = scmp.lt.s32.totalorder %s2883_s21, 5 }
   0xb   : > { %p2964_p6 = por %p157_p3, %p43_p0  ;;  %s2885_s27 = smov [#allocation5]  }
   0xc   : > { %s3660_s24 = scalar_select %p2959_p4, 1, 0 }
   0xd   : > { %s3661_s25 = scalar_select %p2964_p6, 1, 0 }
   0xe   : > { %p2969_p8 = pnand %p1858_p5, %p164_p7  ;;  %s176_s28 = sshll.u32 %s2885_s27, 4  ;;  %s177_s28 = int_to_ptr.vmem [resolvable:$true] %s176_s28 }
   0xf   : > { %s2886_s30 = smov [#allocation8]   ;;  %s2667_s9 = scalar_lea.hbm %s3652_s1, 32768 }
  0x10   : > { %s3662_s26 = scalar_select %p2969_p8, 1, 0 }
  0x11   : > { %p2464_p9 = pneg %p2969_p8  ;;  %s200_s6 = sshll.u32 %s2886_s30, 4  ;;  %s2981_s6 = int_to_ptr.vmem [resolvable:$true] %s200_s6 }
  0x12   : > { %p2668_p11 = scmp.ne.s32.totalorder %s3652_s1, %s2667_s9  ;;  %p2674_p3 = scmp.lt.u32.totalorder %s2667_s9, %s3652_s1 }
  0x13   : > { %p2977_p10 = pnand %p2464_p9, %p3657_p1 }
  0x15   : > { %p2991_p12 = pneg %p2977_p10 }
  0x17   : > { %p2670_p13 = pnand %p2991_p12, %p2668_p11 }
  0x19   : > { %p2671_p0 = pneg %p2670_p13 }
  0x1b   : > { %p2676_p5 = pnand %p2674_p3, %p2671_p0 }
  0x1d   : > { %2679 = shalt.err (!%p2676_p5)
}
  0x1e   : > { %s2680_s15 = scalar_lea.vmem %s177_s28, 32768  ;;  %p2688_p2 = scmp.lt.s32.totalorder %s177_s28, %s177_s28 }
  0x1f   : > { %p2681_p7 = scmp.ne.s32.totalorder %s177_s28, %s2680_s15  ;;  %p2689_p6 = scmp.lt.s32.totalorder %s2680_s15, %s2680_s15 }
  0x21   : > { %p2683_p9 = pnand %p2681_p7, %p2991_p12  ;;  %p2690_p4 = por %p2689_p6, %p2688_p2 }
  0x23   : > { %p2684_p1 = pneg %p2683_p9 }
  0x25   : > { %p2691_p8 = pnand %p2690_p4, %p2684_p1 }
  0x27   : > { %2694 = shalt.err (!%p2691_p8)
}
  0x28   : > { %s2887_s16 = smov 256   ;;  %s2888_s17 = smov 16  }
  0x29   : > { %2467 = dma.hbm_to_vmem [thread:$0]  (!%p2977_p10), %s3652_s1, 32768, %s177_s28, [#allocation6], %s2887_s16, %s2887_s16, %s2888_s17  }
  0x2a   : > { %s2695_s8 = scalar_lea.hbm %s3654_s3, 4096 }
  0x2b   : > { %p2696_p11 = scmp.ne.s32.totalorder %s3654_s3, %s2695_s8  ;;  %p2702_p4 = scmp.lt.u32.totalorder %s2695_s8, %s3654_s3 }
  0x2d   : > { %p2698_p1 = pnand %p2696_p11, %p2991_p12 }
  0x2f   : > { %p2699_p2 = pneg %p2698_p1 }
  0x31   : > { %p2704_p6 = pnand %p2702_p4, %p2699_p2 }
  0x33   : > { %2707 = shalt.err (!%p2704_p6)
}
  0x34   : > { %s2708_s28 = scalar_lea.vmem %s2981_s6, 4096  ;;  %p2716_p3 = scmp.lt.s32.totalorder %s2981_s6, %s2981_s6 }
  0x35   : > { %p2709_p8 = scmp.ne.s32.totalorder %s2981_s6, %s2708_s28  ;;  %p2717_p5 = scmp.lt.s32.totalorder %s2708_s28, %s2708_s28 }
  0x37   : > { %p2711_p13 = pnand %p2709_p8, %p2991_p12  ;;  %p2718_p7 = por %p2717_p5, %p2716_p3 }
  0x39   : > { %p2712_p0 = pneg %p2711_p13 }
  0x3b   : > { %p2719_p9 = pnand %p2718_p7, %p2712_p0 }
  0x3d   : > { %2722 = shalt.err (!%p2719_p9)
}
  0x3e   : > { %s2889_s14 = smov 128   ;;  %s2890_s15 = smov 8  }
  0x3f   : > { %2473 = dma.hbm_to_vmem [thread:$0]  (!%p2977_p10), %s3654_s3, 4096, %s2981_s6, [#allocation9], %s2889_s14, %s2889_s14, %s2890_s15  }
  0x40   : > { %s2891_s23 = smov [#allocation7]   ;;  %s2892_s30 = smov [#allocation10]  }
  0x41   : > { %s190_s27 = sshll.u32 %s2891_s23, 4  ;;  %s214_s7 = sshll.u32 %s2892_s30, 4  ;;  %s191_s27 = int_to_ptr.vmem [resolvable:$true] %s190_s27  ;;  %s3030_s7 = int_to_ptr.vmem [resolvable:$true] %s214_s7 }
  0x42   : > { %s2723_s10 = scalar_lea.hbm %s3653_s2, 32 }
  0x43   : > { %p2724_p11 = scmp.ne.s32.totalorder %s3653_s2, %s2723_s10  ;;  %p2730_p4 = scmp.lt.u32.totalorder %s2723_s10, %s3653_s2 }
  0x45   : > { %p2726_p1 = pnand %p2724_p11, %p2991_p12 }
  0x47   : > { %p2727_p2 = pneg %p2726_p1 }
  0x49   : > { %p2732_p6 = pnand %p2730_p4, %p2727_p2 }
  0x4b   : > { %2735 = shalt.err (!%p2732_p6)
}
  0x4c   : > { %s2736_s14 = scalar_lea.vmem %s191_s27, 32  ;;  %p2744_p3 = scmp.lt.s32.totalorder %s191_s27, %s191_s27 }
  0x4d   : > { %p2737_p8 = scmp.ne.s32.totalorder %s191_s27, %s2736_s14  ;;  %p2745_p5 = scmp.lt.s32.totalorder %s2736_s14, %s2736_s14 }
  0x4f   : > { %p2739_p13 = pnand %p2737_p8, %p2991_p12  ;;  %p2746_p7 = por %p2745_p5, %p2744_p3 }
  0x51   : > { %p2740_p0 = pneg %p2739_p13 }
  0x53   : > { %p2747_p9 = pnand %p2746_p7, %p2740_p0 }
  0x55   : > { %2750 = shalt.err (!%p2747_p9)
}
  0x56   : > { %2470 = dma.hbm_to_vmem [thread:$0]  (!%p2977_p10), %s3653_s2, 32, %s191_s27, [#allocation6]  }
  0x57   : > { %s2751_s30 = scalar_lea.hbm %s3655_s4, 16 }
  0x58   : > { %p2752_p11 = scmp.ne.s32.totalorder %s3655_s4, %s2751_s30  ;;  %p2758_p4 = scmp.lt.u32.totalorder %s2751_s30, %s3655_s4 }
  0x5a   : > { %p2754_p1 = pnand %p2752_p11, %p2991_p12 }
  0x5c   : > { %p2755_p2 = pneg %p2754_p1 }
  0x5e   : > { %p2760_p6 = pnand %p2758_p4, %p2755_p2 }
  0x60   : > { %2763 = shalt.err (!%p2760_p6)
}
  0x61   : > { %s2764_s27 = scalar_lea.vmem %s3030_s7, 16  ;;  %s2771_s13 = scalar_lea.vmem %s3030_s7, 32 }
  0x62   : > { %p2765_p8 = scmp.ne.s32.totalorder %s3030_s7, %s2764_s27  ;;  %p2772_p3 = scmp.lt.s32.totalorder %s3030_s7, %s3030_s7 }
  0x63   : > { %p2773_p5 = scmp.lt.s32.totalorder %s2771_s13, %s2764_s27 }
  0x64   : > { %p2767_p13 = pnand %p2765_p8, %p2991_p12 }
  0x65   : > { %p2774_p7 = por %p2773_p5, %p2772_p3 }
  0x66   : > { %p2768_p0 = pneg %p2767_p13 }
  0x68   : > { %p2775_p9 = pnand %p2774_p7, %p2768_p0 }
  0x6a   : > { %2778 = shalt.err (!%p2775_p9)
}
  0x6b   : > { %2476 = dma.hbm_to_vmem [thread:$0]  (!%p2977_p10), %s3655_s4, 16, %s3030_s7, [#allocation9]  }
  0x6c   : > { %s3075_s12 = sadd.s32 1, %s2883_s21   ;;  %s30_s14 = sadd.s32 1, %s2879_s20 }
  0x6d   : > { %s27_s29 = ssub.s32 %s2883_s21, %s3075_s12  ;;  %p37_p11 = scmp.ne.s32.totalorder %s2879_s20, %s2875_s19 }
  0x6e   : > { %p28_p12 = scmp.eq.s32.totalorder %s27_s29, 0  ;;  %p38_p1 = scmp.eq.s32.totalorder %s2883_s21, 0 }
  0x6f   : > { %p3665_p4 = scmp.eq.s32.totalorder %s2950_s22, 3  ;;  %p2489_p8 = scmp.lt.s32.totalorder %s2883_s21, 4 }
  0x70   : > { %s3084_s15 = scalar_select %p28_p12, %s2879_s20, %s30_s14  }
  0x71   : > { %p39_p2 = por %p38_p1, %p37_p11  ;;  %p3088_p6 = por %p3665_p4, %p37_p11 }
  0x72   : > { %s225_s17 = sand.u32 1, %s2879_s20   ;;  %s1914_s7 = sshll.u32 %s2883_s21, 14 }
  0x73   : > { %s1864_s23 = sshll.u32 %s225_s17, 10  ;;  %s3098_s9 = scalar_lea.hbm %s3651_s0, %s1914_s7 }
  0x74   : > { %s229_s10 = scalar_lea.vmem [#allocation2], %s1864_s23  ;;  %p3102_p10 = pnand %p2489_p8, %p39_p2 }
  0x75   : > { %s237_s11 = sshll.u32 %s229_s10, 4  ;;  %s3106_s13 = scalar_lea.sflag [#allocation3], %s225_s17  ;;  %s3100_s11 = int_to_ptr.vmem [resolvable:$true] %s237_s11 }
  0x76   : > { %s2779_s28 = scalar_lea.hbm %s3098_s9, 16384  ;;  %p2781_p0 = pneg %p3102_p10 }
  0x77   : > { %p2780_p13 = scmp.ne.s32.totalorder %s3098_s9, %s2779_s28  ;;  %s2784_s14 = scalar_lea.hbm %s3651_s0, 65536 }
  0x78   : > { %p2785_p7 = scmp.lt.u32.totalorder %s3098_s9, %s3651_s0  ;;  %p2786_p9 = scmp.lt.u32.totalorder %s2784_s14, %s2779_s28 }
  0x79   : > { %p2782_p3 = pnand %p2781_p0, %p2780_p13  ;;  %p2788_p11 = scmp.lt.u32.totalorder %s2779_s28, %s3098_s9 }
  0x7a   : > { %p2787_p12 = por %p2786_p9, %p2785_p7 }
  0x7b   : > { %p2783_p5 = pneg %p2782_p3 }
  0x7c   : > { %p2789_p1 = por %p2788_p11, %p2787_p12 }
  0x7e   : > { %p2790_p2 = pnand %p2789_p1, %p2783_p5 }
  0x80   : > { %2793 = shalt.err (!%p2790_p2)
}
  0x81   : > { %s2794_s17 = scalar_lea.vmem %s3100_s11, 16384  ;;  %s2893_s30 = smov [#allocation2]  }
  0x82   : > { %p2795_p4 = scmp.ne.s32.totalorder %s3100_s11, %s2794_s17  ;;  %s2799_s8 = sshll.u32 %s2893_s30, 4  ;;  %s2800_s8 = int_to_ptr.vmem [resolvable:$false] %s2799_s8 }
  0x83   : > { %s2801_s10 = scalar_lea.vmem %s2800_s8, 32768  ;;  %p2802_p3 = scmp.lt.s32.totalorder %s3100_s11, %s2800_s8 }
  0x84   : > { %p2797_p8 = pnand %p2795_p4, %p2781_p0  ;;  %p2803_p7 = scmp.lt.s32.totalorder %s2801_s10, %s2794_s17 }
  0x86   : > { %p2798_p13 = pneg %p2797_p8  ;;  %p2804_p9 = por %p2803_p7, %p2802_p3 }
  0x88   : > { %p2805_p12 = pnand %p2804_p9, %p2798_p13 }
  0x8a   : > { %2808 = shalt.err (!%p2805_p12)
}
  0x8b   : > { %s2894_s28 = smov 1024   ;;  %s2895_s6 = smov 64  }
  0x8c   : > { %2480 = dma.hbm_to_vmem [thread:$0]  (!%p3102_p10), %s3098_s9, 16384, %s3100_s11, %s3106_s13, %s2894_s28, %s2894_s28, %s2895_s6  }
  0x8d   : > { %p3668_p0 = scmp.ne.s32.totalorder %s3662_s26, 0 }
  0x8e   : > { %s3137_s29 = sand.u32 (!%p3668_p0), 1, %s2875_s19   ;;  %p3669_p5 = scmp.ne.s32.totalorder (!%p3668_p0), %s3660_s24, 0 }
  0x8f   : > { %249 = sbr.rel (%p3668_p0) target bundleno = 889 (0x379), region = 40  ;;  %s1869_s14 = sshll.u32 (!%p3668_p0), %s3137_s29, 10 }
  0x90   : > { %s252_s23 = scalar_lea.sflag (!%p3668_p0), [#allocation3], %s3137_s29  ;;  %s3141_s7 = scalar_lea.vmem (!%p3668_p0), [#allocation2], %s1869_s14 }
  0x96   : > { %2854 = dma.done.wait (%p3669_p5), %s252_s23, 16384  }
  0x97   : > { %2856 = vsyncadd (%p3669_p5), %s252_s23, 4294950912  ;;  %p3670_p10 = scmp.eq.s32.totalorder %s2950_s22, 0 }
  0x99   : > { %2858 = dma.done.wait (%p3670_p10), [#allocation6], 32800   ;;  %p3671_p11 = pmov %p3670_p10 }
  0x9a   : > { %p3672_p1 = pmov %p3670_p10 }
  0x9b   : > { %2860 = vsyncadd (%p3671_p11), [#allocation6], 4294934496 }
  0x9c   : > { %2862 = dma.done.wait (%p3672_p1), [#allocation9], 4112   ;;  %p3673_p2 = pmov %p3672_p1 }
  0x9d   : > { %v493_v0 = vld [vmem:[#allocation5 + $0x208] sm:$0xff]  ;;  %v495_v1 = vld [vmem:[#allocation5 + $0x218] sm:$0xff]  ;;  %v492_v2 = vld [vmem:[#allocation5 + $0x200] sm:$0xff]  ;;  %s1874_s24 = sshll.u32 %s3137_s29, 7  ;;  %s1915_s9 = sshll.u32 %s2950_s22, 11 }
  0x9e   : > { %2864 = vsyncadd (%p3673_p2), [#allocation9], 4294963184  ;;  %v2060_v3 = vpack.c.bf16 %v495_v1, %v493_v0  ;;  %v494_v4 = vld [vmem:[#allocation5 + $0x210] sm:$0xff]  ;;  %v497_v5 = vld [vmem:[#allocation5 + $0x228] sm:$0xff]  ;;  %s3568_s26 = scalar_lea.vmem [#allocation11], %s1874_s24  ;;  %s3604_s17 = scalar_lea.hbm %s3656_s5, %s1915_s9 }
  0x9f   : > { %v499_v6 = vld [vmem:[#allocation5 + $0x238] sm:$0xff]  ;;  %v2062_v7 = vpack.c.bf16 %v494_v4, %v492_v2  ;;  %v496_v9 = vld [vmem:[#allocation5 + $0x220] sm:$0xff]  ;;  %v498_v10 = vld [vmem:[#allocation5 + $0x230] sm:$0xff]  ;;  %s1746_s11 = sshll.u32 %s3568_s26, 4  ;;  %s1733_s30 = scalar_lea.sflag [#allocation4], %s3137_s29  ;;  %s3606_s11 = int_to_ptr.vmem [resolvable:$true] %s1746_s11 }
  0xa0   : > { %v2064_v8 = vpack.c.bf16 %v499_v6, %v497_v5  ;;  %v501_v11 = vld [vmem:[#allocation5 + $0x248] sm:$0xff]  ;;  %2061 = vmatprep.subr.bf16.mxu0 %v2060_v3  ;;  %v503_v12 = vld [vmem:[#allocation5 + $0x258] sm:$0xff]  ;;  %v2066_v13 = vpack.c.bf16 %v498_v10, %v496_v9  ;;  %v500_v15 = vld [vmem:[#allocation5 + $0x240] sm:$0xff]  ;;  %s2809_s8 = scalar_lea.vmem %s3606_s11, 2048  ;;  %s2896_s22 = smov [#allocation11]  }
  0xa1   : > { %2063 = vmatpush1.bf16.msra.mxu0 %v2062_v7  ;;  %v2068_v14 = vpack.c.bf16 %v503_v12, %v501_v11  ;;  %v502_v16 = vld [vmem:[#allocation5 + $0x250] sm:$0xff]  ;;  %v505_v17 = vld [vmem:[#allocation5 + $0x268] sm:$0xff]  ;;  %v507_v18 = vld [vmem:[#allocation5 + $0x278] sm:$0xff]  ;;  %p2810_p4 = scmp.ne.s32.totalorder %s3606_s11, %s2809_s8  ;;  %s2813_s10 = sshll.u32 %s2896_s22, 4  ;;  %s2814_s10 = int_to_ptr.vmem [resolvable:$false] %s2813_s10 }
  0xa2   : > { %2065 = vmatprep.subr.bf16.mxu0 %v2064_v8  ;;  %v2070_v19 = vpack.c.bf16 %v502_v16, %v500_v15  ;;  %v2072_v20 = vpack.c.bf16 %v507_v18, %v505_v17  ;;  %v504_v21 = vld [vmem:[#allocation5 + $0x260] sm:$0xff]  ;;  %v506_v22 = vld [vmem:[#allocation5 + $0x270] sm:$0xff]  ;;  %v509_v23 = vld [vmem:[#allocation5 + $0x288] sm:$0xff]  ;;  %s2815_s28 = scalar_lea.vmem %s2814_s10, 4096  ;;  %p2816_p3 = scmp.lt.s32.totalorder %s3606_s11, %s2814_s10 }
  0xa3   : > { %v511_v24 = vld [vmem:[#allocation5 + $0x298] sm:$0xff]  ;;  %v2074_v25 = vpack.c.bf16 %v506_v22, %v504_v21  ;;  %v429_v26 = vld [vmem:[#allocation5 + $0x8] sm:$0xff]  ;;  %v428_v28 = vld [vmem:[#allocation5] sm:$0xff]  ;;  %p2811_p8 = pnand %p2810_p4, %p3088_p6  ;;  %p2817_p7 = scmp.lt.s32.totalorder %s2815_s28, %s2809_s8 }
  0xa4   : > { %v431_v27 = vld [vmem:[#allocation5 + $0x18] sm:$0xff]  ;;  %v2076_v29 = vpack.c.bf16 %v511_v24, %v509_v23  ;;  %v508_v30 = vld [vmem:[#allocation5 + $0x280] sm:$0xff]  ;;  %v510_v31 = vld [vmem:[#allocation5 + $0x290] sm:$0xff] }
  0xa5   : > { %2067 = vmatpush1.bf16.msra.mxu0 %v2066_v13  ;;  %v1996_v32 = vpack.c.bf16 %v431_v27, %v429_v26  ;;  %v430_v33 = vld [vmem:[#allocation5 + $0x10] sm:$0xff]  ;;  %v513_v34 = vld [vmem:[#allocation5 + $0x2a8] sm:$0xff]  ;;  %v515_v35 = vld [vmem:[#allocation5 + $0x2b8] sm:$0xff]  ;;  %v2078_v41 = vpack.c.bf16 %v510_v31, %v508_v30  ;;  %p2812_p13 = pneg %p2811_p8  ;;  %p2818_p9 = por %p2817_p7, %p2816_p3 }
  0xa6   : > { %2069 = vmatprep.subr.bf16.mxu0 %v2068_v14  ;;  %v1998_v36 = vpack.c.bf16 %v430_v33, %v428_v28  ;;  %v433_v37 = vld [vmem:[#allocation5 + $0x28] sm:$0xff]  ;;  %v435_v38 = vld [vmem:[#allocation5 + $0x38] sm:$0xff]  ;;  %v432_v39 = vld [vmem:[#allocation5 + $0x20] sm:$0xff]  ;;  %v2080_v46 = vpack.c.bf16 %v515_v35, %v513_v34 }
  0xa7   : > { %1997 = vmatprep.subr.bf16.mxu1 %v1996_v32  ;;  %v434_v40 = vld [vmem:[#allocation5 + $0x30] sm:$0xff]  ;;  %v512_v42 = vld [vmem:[#allocation5 + $0x2a0] sm:$0xff]  ;;  %v2000_v44 = vpack.c.bf16 %v435_v38, %v433_v37  ;;  %v517_v47 = vld [vmem:[#allocation5 + $0x2c8] sm:$0xff]  ;;  %p2819_p12 = pnand %p2818_p9, %p2812_p13 }
  0xa8   : > { %v514_v43 = vld [vmem:[#allocation5 + $0x2b0] sm:$0xff]  ;;  %1999 = vmatpush1.bf16.msra.mxu1 %v1998_v36  ;;  %v2002_v45 = vpack.c.bf16 %v434_v40, %v432_v39  ;;  %v437_v48 = vld [vmem:[#allocation5 + $0x48] sm:$0xff]  ;;  %v439_v49 = vld [vmem:[#allocation5 + $0x58] sm:$0xff] }
  0xa9   : > { %2071 = vmatpush1.bf16.msra.mxu0 %v2070_v19  ;;  %v519_v50 = vld [vmem:[#allocation5 + $0x2d8] sm:$0xff]  ;;  %2001 = vmatprep.subr.bf16.mxu1 %v2000_v44  ;;  %v2004_v51 = vpack.c.bf16 %v439_v49, %v437_v48  ;;  %v436_v52 = vld [vmem:[#allocation5 + $0x40] sm:$0xff]  ;;  %v438_v53 = vld [vmem:[#allocation5 + $0x50] sm:$0xff]  ;;  %v2082_v54 = vpack.c.bf16 %v514_v43, %v512_v42 }
  0xaa   : > { %2073 = vmatprep.subr.bf16.mxu0 %v2072_v20  ;;  %v516_v55 = vld [vmem:[#allocation5 + $0x2c0] sm:$0xff]  ;;  %v2006_v56 = vpack.c.bf16 %v438_v53, %v436_v52  ;;  %v441_v57 = vld [vmem:[#allocation5 + $0x68] sm:$0xff]  ;;  %v443_v58 = vld [vmem:[#allocation5 + $0x78] sm:$0xff]  ;;  %v2084_v59 = vpack.c.bf16 %v519_v50, %v517_v47 }
  0xab   : > { %v518_v60 = vld [vmem:[#allocation5 + $0x2d0] sm:$0xff]  ;;  %v2008_v61 = vpack.c.bf16 %v443_v58, %v441_v57  ;;  %v440_v62 = vld [vmem:[#allocation5 + $0x60] sm:$0xff]  ;;  %v521_v0 = vld [vmem:[#allocation5 + $0x2e8] sm:$0xff] }
  0xac   : > { %2003 = vmatpush1.bf16.msra.mxu1 %v2002_v45  ;;  %v442_v63 = vld [vmem:[#allocation5 + $0x70] sm:$0xff]  ;;  %v523_v1 = vld [vmem:[#allocation5 + $0x2f8] sm:$0xff]  ;;  %v445_v2 = vld [vmem:[#allocation5 + $0x88] sm:$0xff]  ;;  %v2086_v4 = vpack.c.bf16 %v518_v60, %v516_v55 }
  0xad   : > { %2075 = vmatpush1.bf16.msra.mxu0 %v2074_v25  ;;  %2005 = vmatprep.subr.bf16.mxu1 %v2004_v51  ;;  %v447_v3 = vld [vmem:[#allocation5 + $0x98] sm:$0xff]  ;;  %v520_v5 = vld [vmem:[#allocation5 + $0x2e0] sm:$0xff]  ;;  %v522_v6 = vld [vmem:[#allocation5 + $0x2f0] sm:$0xff]  ;;  %v2010_v7 = vpack.c.bf16 %v442_v63, %v440_v62  ;;  %v2088_v8 = vpack.c.bf16 %v523_v1, %v521_v0 }
  0xae   : > { %2077 = vmatprep.subr.bf16.mxu0 %v2076_v29  ;;  %v525_v9 = vld [vmem:[#allocation5 + $0x308] sm:$0xff]  ;;  %v2012_v10 = vpack.c.bf16 %v447_v3, %v445_v2  ;;  %v444_v11 = vld [vmem:[#allocation5 + $0x80] sm:$0xff]  ;;  %v446_v12 = vld [vmem:[#allocation5 + $0x90] sm:$0xff]  ;;  %v2090_v16 = vpack.c.bf16 %v522_v6, %v520_v5 }
  0xaf   : > { %v527_v13 = vld [vmem:[#allocation5 + $0x318] sm:$0xff]  ;;  %v449_v14 = vld [vmem:[#allocation5 + $0xa8] sm:$0xff]  ;;  %v524_v17 = vld [vmem:[#allocation5 + $0x300] sm:$0xff]  ;;  %v2014_v19 = vpack.c.bf16 %v446_v12, %v444_v11 }
  0xb0   : > { %2007 = vmatpush1.bf16.msra.mxu1 %v2006_v56  ;;  %v451_v15 = vld [vmem:[#allocation5 + $0xb8] sm:$0xff]  ;;  %v526_v18 = vld [vmem:[#allocation5 + $0x310] sm:$0xff]  ;;  %v2092_v20 = vpack.c.bf16 %v527_v13, %v525_v9  ;;  %v529_v21 = vld [vmem:[#allocation5 + $0x328] sm:$0xff] }
  0xb1   : > { %2079 = vmatpush1.bf16.msra.mxu0 %v2078_v41  ;;  %2009 = vmatprep.subr.bf16.mxu1 %v2008_v61  ;;  %v2016_v22 = vpack.c.bf16 %v451_v15, %v449_v14  ;;  %v448_v23 = vld [vmem:[#allocation5 + $0xa0] sm:$0xff]  ;;  %v450_v24 = vld [vmem:[#allocation5 + $0xb0] sm:$0xff]  ;;  %v531_v25 = vld [vmem:[#allocation5 + $0x338] sm:$0xff]  ;;  %v2094_v28 = vpack.c.bf16 %v526_v18, %v524_v17 }
  0xb2   : > { %2081 = vmatprep.subr.bf16.mxu0 %v2080_v46  ;;  %v453_v26 = vld [vmem:[#allocation5 + $0xc8] sm:$0xff]  ;;  %v455_v27 = vld [vmem:[#allocation5 + $0xd8] sm:$0xff]  ;;  %v528_v29 = vld [vmem:[#allocation5 + $0x320] sm:$0xff]  ;;  %v2018_v31 = vpack.c.bf16 %v450_v24, %v448_v23  ;;  %v2096_v33 = vpack.c.bf16 %v531_v25, %v529_v21 }
  0xb3   : > { %v530_v30 = vld [vmem:[#allocation5 + $0x330] sm:$0xff]  ;;  %v303_v32 = vld [vmem:[%s3141_s7 + $0x18] sm:$0xff]  ;;  %v533_v34 = vld [vmem:[#allocation5 + $0x348] sm:$0xff]  ;;  %v2020_v35 = vpack.c.bf16 %v455_v27, %v453_v26 }
  0xb4   : > { %2011 = vmatpush1.bf16.msra.mxu1 %v2010_v7  ;;  %v452_v36 = vld [vmem:[#allocation5 + $0xc0] sm:$0xff]  ;;  %v454_v37 = vld [vmem:[#allocation5 + $0xd0] sm:$0xff]  ;;  %v535_v38 = vld [vmem:[#allocation5 + $0x358] sm:$0xff]  ;;  %921 = vmatprep.mubr.f32.mxu0 %v303_v32  ;;  %v2098_v41 = vpack.c.bf16 %v530_v30, %v528_v29 }
  0xb5   : > { %2083 = vmatpush1.bf16.msra.mxu0 %v2082_v54  ;;  %2013 = vmatprep.subr.bf16.mxu1 %v2012_v10  ;;  %v457_v39 = vld [vmem:[#allocation5 + $0xe8] sm:$0xff]  ;;  %v459_v40 = vld [vmem:[#allocation5 + $0xf8] sm:$0xff]  ;;  %v532_v42 = vld [vmem:[#allocation5 + $0x340] sm:$0xff]  ;;  %v2022_v44 = vpack.c.bf16 %v454_v37, %v452_v36  ;;  %v2100_v45 = vpack.c.bf16 %v535_v38, %v533_v34 }
  0xb6   : > { %2085 = vmatprep.subr.bf16.mxu0 %v2084_v59  ;;  %v534_v43 = vld [vmem:[#allocation5 + $0x350] sm:$0xff]  ;;  %v537_v46 = vld [vmem:[#allocation5 + $0x368] sm:$0xff]  ;;  %v2024_v47 = vpack.c.bf16 %v459_v40, %v457_v39  ;;  %v456_v48 = vld [vmem:[#allocation5 + $0xe0] sm:$0xff] }
  0xb7   : > { %v458_v49 = vld [vmem:[#allocation5 + $0xf0] sm:$0xff]  ;;  %v539_v50 = vld [vmem:[#allocation5 + $0x378] sm:$0xff]  ;;  %v461_v51 = vld [vmem:[#allocation5 + $0x108] sm:$0xff]  ;;  %v2102_v53 = vpack.c.bf16 %v534_v43, %v532_v42 }
  0xb8   : > { %2015 = vmatpush1.bf16.msra.mxu1 %v2014_v19  ;;  %v463_v52 = vld [vmem:[#allocation5 + $0x118] sm:$0xff]  ;;  %v536_v54 = vld [vmem:[#allocation5 + $0x360] sm:$0xff]  ;;  %v538_v55 = vld [vmem:[#allocation5 + $0x370] sm:$0xff]  ;;  %v2026_v56 = vpack.c.bf16 %v458_v49, %v456_v48  ;;  %v2104_v57 = vpack.c.bf16 %v539_v50, %v537_v46 }
  0xb9   : > { %2087 = vmatpush1.bf16.msra.mxu0 %v2086_v4  ;;  %2017 = vmatprep.subr.bf16.mxu1 %v2016_v22  ;;  %v541_v58 = vld [vmem:[#allocation5 + $0x388] sm:$0xff]  ;;  %v2028_v59 = vpack.c.bf16 %v463_v52, %v461_v51  ;;  %v460_v60 = vld [vmem:[#allocation5 + $0x100] sm:$0xff]  ;;  %v462_v61 = vld [vmem:[#allocation5 + $0x110] sm:$0xff]  ;;  %v2106_v1 = vpack.c.bf16 %v538_v55, %v536_v54 }
  0xba   : > { %2089 = vmatprep.subr.bf16.mxu0 %v2088_v8  ;;  %v543_v62 = vld [vmem:[#allocation5 + $0x398] sm:$0xff]  ;;  %v465_v63 = vld [vmem:[#allocation5 + $0x128] sm:$0xff]  ;;  %v540_v2 = vld [vmem:[#allocation5 + $0x380] sm:$0xff]  ;;  %v2030_v4 = vpack.c.bf16 %v462_v61, %v460_v60 }
  0xbb   : > { %v467_v0 = vld [vmem:[#allocation5 + $0x138] sm:$0xff]  ;;  %v542_v3 = vld [vmem:[#allocation5 + $0x390] sm:$0xff]  ;;  %v2108_v5 = vpack.c.bf16 %v543_v62, %v541_v58  ;;  %v545_v6 = vld [vmem:[#allocation5 + $0x3a8] sm:$0xff] }
  0xbc   : > { %2019 = vmatpush1.bf16.msra.mxu1 %v2018_v31  ;;  %v2032_v7 = vpack.c.bf16 %v467_v0, %v465_v63  ;;  %v464_v8 = vld [vmem:[#allocation5 + $0x120] sm:$0xff]  ;;  %v466_v9 = vld [vmem:[#allocation5 + $0x130] sm:$0xff]  ;;  %v547_v10 = vld [vmem:[#allocation5 + $0x3b8] sm:$0xff]  ;;  %v2110_v13 = vpack.c.bf16 %v542_v3, %v540_v2 }
  0xbd   : > { %2091 = vmatpush1.bf16.msra.mxu0 %v2090_v16  ;;  %2021 = vmatprep.subr.bf16.mxu1 %v2020_v35  ;;  %v469_v11 = vld [vmem:[#allocation5 + $0x148] sm:$0xff]  ;;  %v471_v12 = vld [vmem:[#allocation5 + $0x158] sm:$0xff]  ;;  %v544_v14 = vld [vmem:[#allocation5 + $0x3a0] sm:$0xff]  ;;  %v2034_v16 = vpack.c.bf16 %v466_v9, %v464_v8  ;;  %v2112_v17 = vpack.c.bf16 %v547_v10, %v545_v6 }
  0xbe   : > { %2093 = vmatprep.subr.bf16.mxu0 %v2092_v20  ;;  %v546_v15 = vld [vmem:[#allocation5 + $0x3b0] sm:$0xff]  ;;  %v549_v18 = vld [vmem:[#allocation5 + $0x3c8] sm:$0xff]  ;;  %v2036_v19 = vpack.c.bf16 %v471_v12, %v469_v11  ;;  %v468_v20 = vld [vmem:[#allocation5 + $0x140] sm:$0xff] }
  0xbf   : > { %v470_v21 = vld [vmem:[#allocation5 + $0x150] sm:$0xff]  ;;  %v551_v22 = vld [vmem:[#allocation5 + $0x3d8] sm:$0xff]  ;;  %v473_v23 = vld [vmem:[#allocation5 + $0x168] sm:$0xff]  ;;  %v2114_v25 = vpack.c.bf16 %v546_v15, %v544_v14 }
  0xc0   : > { %2023 = vmatpush1.bf16.msra.mxu1 %v2022_v44  ;;  %v475_v24 = vld [vmem:[#allocation5 + $0x178] sm:$0xff]  ;;  %v548_v26 = vld [vmem:[#allocation5 + $0x3c0] sm:$0xff]  ;;  %v550_v27 = vld [vmem:[#allocation5 + $0x3d0] sm:$0xff]  ;;  %v2116_v29 = vpack.c.bf16 %v551_v22, %v549_v18 }
  0xc1   : > { %2095 = vmatpush1.bf16.msra.mxu0 %v2094_v28  ;;  %2025 = vmatprep.subr.bf16.mxu1 %v2024_v47  ;;  %v2038_v28 = vpack.c.bf16 %v470_v21, %v468_v20  ;;  %v553_v30 = vld [vmem:[#allocation5 + $0x3e8] sm:$0xff]  ;;  %v2040_v31 = vpack.c.bf16 %v475_v24, %v473_v23  ;;  %v472_v32 = vld [vmem:[#allocation5 + $0x160] sm:$0xff]  ;;  %v555_v34 = vld [vmem:[#allocation5 + $0x3f8] sm:$0xff]  ;;  %v2118_v37 = vpack.c.bf16 %v550_v27, %v548_v26 }
  0xc2   : > { %2097 = vmatprep.subr.bf16.mxu0 %v2096_v33  ;;  %v474_v33 = vld [vmem:[#allocation5 + $0x170] sm:$0xff]  ;;  %v477_v35 = vld [vmem:[#allocation5 + $0x188] sm:$0xff]  ;;  %v479_v36 = vld [vmem:[#allocation5 + $0x198] sm:$0xff] }
  0xc3   : > { %v552_v38 = vld [vmem:[#allocation5 + $0x3e0] sm:$0xff]  ;;  %v554_v39 = vld [vmem:[#allocation5 + $0x3f0] sm:$0xff]  ;;  %v2042_v40 = vpack.c.bf16 %v474_v33, %v472_v32  ;;  %v557_v42 = vld [vmem:[#allocation5 + $0x408] sm:$0xff]  ;;  %v2044_v43 = vpack.c.bf16 %v479_v36, %v477_v35 }
  0xc4   : > { %2027 = vmatpush1.bf16.msra.mxu1 %v2026_v56  ;;  %v476_v44 = vld [vmem:[#allocation5 + $0x180] sm:$0xff]  ;;  %v559_v46 = vld [vmem:[#allocation5 + $0x418] sm:$0xff]  ;;  %v481_v47 = vld [vmem:[#allocation5 + $0x1a8] sm:$0xff]  ;;  %v2122_v49 = vpack.c.bf16 %v554_v39, %v552_v38 }
  0xc5   : > { %2099 = vmatpush1.bf16.msra.mxu0 %v2098_v41  ;;  %2029 = vmatprep.subr.bf16.mxu1 %v2028_v59  ;;  %v2120_v41 = vpack.c.bf16 %v555_v34, %v553_v30  ;;  %v483_v48 = vld [vmem:[#allocation5 + $0x1b8] sm:$0xff]  ;;  %v301_v51 = vld [vmem:[%s3141_s7 + $0x8] sm:$0xff]  ;;  %v2124_v52 = vpack.c.bf16 %v559_v46, %v557_v42  ;;  %v558_v54 = vld [vmem:[#allocation5 + $0x410] sm:$0xff] }
  0xc6   : > { %2101 = vmatprep.subr.bf16.mxu0 %v2100_v45  ;;  %v478_v45 = vld [vmem:[#allocation5 + $0x190] sm:$0xff]  ;;  %v561_v55 = vld [vmem:[#allocation5 + $0x428] sm:$0xff]  ;;  %v2048_v56 = vpack.c.bf16 %v483_v48, %v481_v47  ;;  %v480_v58 = vld [vmem:[#allocation5 + $0x1a0] sm:$0xff]  ;;  %760 = vmatprep.mubr.f32.mxu1 %v301_v51 }
  0xc7   : > { %v2046_v50 = vpack.c.bf16 %v478_v45, %v476_v44  ;;  %v482_v59 = vld [vmem:[#allocation5 + $0x1b0] sm:$0xff]  ;;  %v485_v60 = vld [vmem:[#allocation5 + $0x1c8] sm:$0xff]  ;;  %v487_v61 = vld [vmem:[#allocation5 + $0x1d8] sm:$0xff] }
  0xc8   : > { %2031 = vmatpush1.bf16.msra.mxu1 %v2030_v4  ;;  %v302_v62 = vld [vmem:[%s3141_s7 + $0x10] sm:$0xff]  ;;  %v311_v0 = vld [vmem:[%s3141_s7 + $0x58] sm:$0xff]  ;;  %v560_v2 = vld [vmem:[#allocation5 + $0x420] sm:$0xff] }
  0xc9   : > { %2103 = vmatpush1.bf16.msra.mxu0 %v2102_v53  ;;  %2033 = vmatprep.subr.bf16.mxu1 %v2032_v7  ;;  %v556_v53 = vld [vmem:[#allocation5 + $0x400] sm:$0xff]  ;;  %v562_v3 = vld [vmem:[#allocation5 + $0x430] sm:$0xff]  ;;  %v565_v4 = vld [vmem:[#allocation5 + $0x448] sm:$0xff]  ;;  %v2052_v7 = vpack.c.bf16 %v487_v61, %v485_v60 }
  0xca   : > { %2105 = vmatprep.subr.bf16.mxu0 %v2104_v57  ;;  %v563_v57 = vld [vmem:[#allocation5 + $0x438] sm:$0xff]  ;;  %v2126_v63 = vpack.c.bf16 %v558_v54, %v556_v53  ;;  %v484_v8 = vld [vmem:[#allocation5 + $0x1c0] sm:$0xff]  ;;  %v486_v9 = vld [vmem:[#allocation5 + $0x1d0] sm:$0xff] }
  0xcb   : > { %v567_v6 = vld [vmem:[#allocation5 + $0x458] sm:$0xff]  ;;  %v489_v10 = vld [vmem:[#allocation5 + $0x1e8] sm:$0xff]  ;;  %v310_v12 = vld [vmem:[%s3141_s7 + $0x50] sm:$0xff] }
  0xcc   : > { %2035 = vmatpush1.bf16.msra.mxu1 %v2034_v16  ;;  %v491_v11 = vld [vmem:[#allocation5 + $0x1f8] sm:$0xff]  ;;  %v2132_v15 = vpack.c.bf16 %v567_v6, %v565_v4  ;;  %v564_v16 = vld [vmem:[#allocation5 + $0x440] sm:$0xff]  ;;  %v569_v18 = vld [vmem:[#allocation5 + $0x468] sm:$0xff] }
  0xcd   : > { %2107 = vmatpush1.bf16.msra.mxu0 %v2106_v1  ;;  %2037 = vmatprep.subr.bf16.mxu1 %v2036_v19  ;;  %v2128_v1 = vpack.c.bf16 %v563_v57, %v561_v55  ;;  %v319_v14 = vld [vmem:[%s3141_s7 + $0x98] sm:$0xff]  ;;  %v2054_v19 = vpack.c.bf16 %v486_v9, %v484_v8  ;;  %v2056_v21 = vpack.c.bf16 %v491_v11, %v489_v10  ;;  %v488_v22 = vld [vmem:[#allocation5 + $0x1e0] sm:$0xff]  ;;  %v490_v23 = vld [vmem:[#allocation5 + $0x1f0] sm:$0xff] }
  0xce   : > { %2109 = vmatprep.subr.bf16.mxu0 %v2108_v5  ;;  %v2050_v5 = vpack.c.bf16 %v482_v59, %v480_v58  ;;  %v571_v20 = vld [vmem:[#allocation5 + $0x478] sm:$0xff]  ;;  %v621_v24 = vld [vmem:[#allocation5 + $0x608] sm:$0xff]  ;;  %v318_v26 = vld [vmem:[%s3141_s7 + $0x90] sm:$0xff]  ;;  %v2058_v32 = vpack.c.bf16 %v490_v23, %v488_v22 }
  0xcf   : > { %v568_v30 = vld [vmem:[#allocation5 + $0x460] sm:$0xff]  ;;  %v573_v33 = vld [vmem:[#allocation5 + $0x488] sm:$0xff]  ;;  %v575_v34 = vld [vmem:[#allocation5 + $0x498] sm:$0xff] }
  0xd0   : > { %2039 = vmatpush1.bf16.msra.mxu1 %v2038_v28  ;;  %v327_v28 = vld [vmem:[%s3141_s7 + $0xd8] sm:$0xff]  ;;  %v620_v36 = vld [vmem:[#allocation5 + $0x600] sm:$0xff]  ;;  %v326_v38 = vld [vmem:[%s3141_s7 + $0xd0] sm:$0xff] }
  0xd1   : > { %2111 = vmatpush1.bf16.msra.mxu0 %v2110_v13  ;;  %2041 = vmatprep.subr.bf16.mxu1 %v2040_v31  ;;  %v2130_v13 = vpack.c.bf16 %v562_v3, %v560_v2  ;;  %v570_v31 = vld [vmem:[#allocation5 + $0x470] sm:$0xff]  ;;  %v335_v42 = vld [vmem:[%s3141_s7 + $0x118] sm:$0xff]  ;;  %v572_v44 = vld [vmem:[#allocation5 + $0x480] sm:$0xff] }
  0xd2   : > { %2113 = vmatprep.subr.bf16.mxu0 %v2112_v17  ;;  %v566_v17 = vld [vmem:[#allocation5 + $0x450] sm:$0xff]  ;;  %v2138_v39 = vpack.c.bf16 %v570_v31, %v568_v30  ;;  %v577_v46 = vld [vmem:[#allocation5 + $0x4a8] sm:$0xff]  ;;  %v579_v47 = vld [vmem:[#allocation5 + $0x4b8] sm:$0xff] }
  0xd3   : > { %v2134_v27 = vpack.c.bf16 %v566_v17, %v564_v16  ;;  %v574_v45 = vld [vmem:[#allocation5 + $0x490] sm:$0xff]  ;;  %v300_v48 = vld [vmem:[%s3141_s7] sm:$0xff]  ;;  %v631_v57 = vld [vmem:[#allocation5 + $0x658] sm:$0xff]  ;;  %v2144_v59 = vpack.c.bf16 %v579_v47, %v577_v46 }
  0xd4   : > { %2043 = vmatpush1.bf16.msra.mxu1 %v2042_v40  ;;  %v625_v40 = vld [vmem:[#allocation5 + $0x628] sm:$0xff]  ;;  %v626_v53 = vld [vmem:[#allocation5 + $0x630] sm:$0xff]  ;;  %v2142_v55 = vpack.c.bf16 %v574_v45, %v572_v44  ;;  %v343_v58 = vld [vmem:[%s3141_s7 + $0x158] sm:$0xff] }
  0xd5   : > { %2115 = vmatpush1.bf16.msra.mxu0 %v2114_v25  ;;  %2045 = vmatprep.subr.bf16.mxu1 %v2044_v43  ;;  %v623_v25 = vld [vmem:[#allocation5 + $0x618] sm:$0xff]  ;;  %v2140_v43 = vpack.c.bf16 %v575_v34, %v573_v33  ;;  %v334_v54 = vld [vmem:[%s3141_s7 + $0x110] sm:$0xff]  ;;  %v576_v60 = vld [vmem:[#allocation5 + $0x4a0] sm:$0xff] }
  0xd6   : > { %2117 = vmatprep.subr.bf16.mxu0 %v2116_v29  ;;  %v2136_v29 = vpack.c.bf16 %v571_v20, %v569_v18  ;;  %v3163_v35 = vpack.c.bf16 %v623_v25, %v621_v24  ;;  %v578_v61 = vld [vmem:[#allocation5 + $0x4b0] sm:$0xff]  ;;  %v317_v2 = vld [vmem:[%s3141_s7 + $0x88] sm:$0xff]  ;;  %v628_v4 = vld [vmem:[#allocation5 + $0x640] sm:$0xff] }
  0xd7   : > { %v342_v6 = vld [vmem:[%s3141_s7 + $0x150] sm:$0xff]  ;;  %v633_v8 = vld [vmem:[#allocation5 + $0x668] sm:$0xff]  ;;  %v635_v9 = vld [vmem:[#allocation5 + $0x678] sm:$0xff] }
  0xd8   : > { %2047 = vmatpush1.bf16.msra.mxu1 %v2046_v50  ;;  %v309_v50 = vld [vmem:[%s3141_s7 + $0x48] sm:$0xff]  ;;  %v351_v10 = vld [vmem:[%s3141_s7 + $0x198] sm:$0xff]  ;;  %v316_v16 = vld [vmem:[%s3141_s7 + $0x80] sm:$0xff] }
  0xd9   : > { %2119 = vmatpush1.bf16.msra.mxu0 %v2118_v37  ;;  %2049 = vmatprep.subr.bf16.mxu1 %v2048_v56  ;;  %v622_v37 = vld [vmem:[#allocation5 + $0x610] sm:$0xff]  ;;  %v629_v56 = vld [vmem:[#allocation5 + $0x648] sm:$0xff]  ;;  %v632_v20 = vld [vmem:[#allocation5 + $0x660] sm:$0xff] }
  0xda   : > { %2121 = vmatprep.subr.bf16.mxu0 %v2120_v41  ;;  %v627_v41 = vld [vmem:[#allocation5 + $0x638] sm:$0xff]  ;;  %v3182_v3 = vpack.c.bf16 %v631_v57, %v629_v56  ;;  %v325_v18 = vld [vmem:[%s3141_s7 + $0xc8] sm:$0xff]  ;;  %v350_v22 = vld [vmem:[%s3141_s7 + $0x190] sm:$0xff] }
  0xdb   : > { %v3172_v51 = vpack.c.bf16 %v627_v41, %v625_v40  ;;  %v637_v24 = vld [vmem:[#allocation5 + $0x688] sm:$0xff]  ;;  %v639_v25 = vld [vmem:[#allocation5 + $0x698] sm:$0xff]  ;;  %v588_v45 = vld [vmem:[#allocation5 + $0x500] sm:$0xff] }
  0xdc   : > { %2051 = vmatpush1.bf16.msra.mxu1 %v2050_v5  ;;  %v630_v5 = vld [vmem:[#allocation5 + $0x650] sm:$0xff]  ;;  %v589_v30 = vld [vmem:[#allocation5 + $0x508] sm:$0xff]  ;;  %v591_v31 = vld [vmem:[#allocation5 + $0x518] sm:$0xff] }
  0xdd   : > { %2123 = vmatpush1.bf16.msra.mxu0 %v2122_v49  ;;  %2053 = vmatprep.subr.bf16.mxu1 %v2052_v7  ;;  %v3169_v49 = vpack.c.bf16 %v622_v37, %v620_v36  ;;  %v2146_v7 = vpack.c.bf16 %v578_v61, %v576_v60  ;;  %v3188_v17 = vpack.c.bf16 %v630_v5, %v628_v4  ;;  %v333_v34 = vld [vmem:[%s3141_s7 + $0x108] sm:$0xff]  ;;  %v636_v37 = vld [vmem:[#allocation5 + $0x680] sm:$0xff]  ;;  %v590_v46 = vld [vmem:[#allocation5 + $0x510] sm:$0xff] }
  0xde   : > { %2125 = vmatprep.subr.bf16.mxu0 %v2124_v52  ;;  %v624_v52 = vld [vmem:[#allocation5 + $0x620] sm:$0xff]  ;;  %v3202_v36 = vpack.c.bf16 %v639_v25, %v637_v24  ;;  %v641_v41 = vld [vmem:[#allocation5 + $0x6a8] sm:$0xff]  ;;  %v2156_v44 = vpack.c.bf16 %v591_v31, %v589_v30  ;;  %v642_v56 = vld [vmem:[#allocation5 + $0x6b0] sm:$0xff] }
  0xdf   : > { %v593_v47 = vld [vmem:[#allocation5 + $0x528] sm:$0xff]  ;;  %v366_v57 = vld [vmem:[%s3141_s7 + $0x210] sm:$0xff]  ;;  %v647_v60 = vld [vmem:[#allocation5 + $0x6d8] sm:$0xff] }
  0xe0   : > { %922 = vmatmul.mubr.f32.vlgmr.msra.gmra.mrb[0].mxu0 %v302_v62  ;;  %2055 = vmatpush1.bf16.msra.mxu1 %v2054_v19  ;;  %v581_v62 = vld [vmem:[#allocation5 + $0x4c8] sm:$0xff]  ;;  %v3192_v19 = vpack.c.bf16 %v635_v9, %v633_v8  ;;  %v375_v61 = vld [vmem:[%s3141_s7 + $0x258] sm:$0xff]  ;;  %v340_v5 = vld [vmem:[%s3141_s7 + $0x140] sm:$0xff] }
  0xe1   : > { %2127 = vmatpush1.bf16.msra.mxu0 %v2126_v63  ;;  %927 = vmatprep.mubr.f32.mxu0 %v311_v0  ;;  %v583_v63 = vld [vmem:[#allocation5 + $0x4d8] sm:$0xff]  ;;  %v308_v0 = vld [vmem:[%s3141_s7 + $0x40] sm:$0xff]  ;;  %v357_v25 = vld [vmem:[%s3141_s7 + $0x1c8] sm:$0xff] }
  0xe2   : > { %2129 = vmatprep.subr.bf16.mxu0 %v2128_v1  ;;  %2057 = vmatprep.subr.bf16.mxu1 %v2056_v21  ;;  %v3178_v1 = vpack.c.bf16 %v626_v53, %v624_v52  ;;  %v2148_v11 = vpack.c.bf16 %v583_v63, %v581_v62  ;;  %v634_v21 = vld [vmem:[#allocation5 + $0x670] sm:$0xff]  ;;  %v341_v53 = vld [vmem:[%s3141_s7 + $0x148] sm:$0xff]  ;;  %v592_v63 = vld [vmem:[#allocation5 + $0x520] sm:$0xff] }
  0xe3   : > { %v3198_v33 = vpack.c.bf16 %v634_v21, %v632_v20  ;;  %v599_v4 = vld [vmem:[#allocation5 + $0x558] sm:$0xff]  ;;  %v644_v9 = vld [vmem:[#allocation5 + $0x6c0] sm:$0xff]  ;;  %v598_v20 = vld [vmem:[#allocation5 + $0x550] sm:$0xff] }
  0xe4   : > { %928 = vmatmul.mubr.f32.gmra.mrb[2].mxu0 %v310_v12  ;;  %2059 = vmatpush1.bf16.msra.mxu1 %v2058_v32  ;;  %v580_v12 = vld [vmem:[#allocation5 + $0x4c0] sm:$0xff]  ;;  %v601_v21 = vld [vmem:[#allocation5 + $0x568] sm:$0xff] }
  0xe5   : > { %2131 = vmatpush1.bf16.msra.mxu0 %v2130_v13  ;;  %933 = vmatprep.mubr.f32.mxu0 %v319_v14  ;;  %v582_v13 = vld [vmem:[#allocation5 + $0x4d0] sm:$0xff]  ;;  %v585_v14 = vld [vmem:[#allocation5 + $0x4e8] sm:$0xff]  ;;  %v324_v32 = vld [vmem:[%s3141_s7 + $0xc0] sm:$0xff] }
  0xe6   : > { %2133 = vmatprep.subr.bf16.mxu0 %v2132_v15  ;;  %2284 = vmatprep.subr.bf16.mxu1 %v3163_v35  ;;  %v587_v15 = vld [vmem:[#allocation5 + $0x4f8] sm:$0xff]  ;;  %v2150_v23 = vpack.c.bf16 %v582_v13, %v580_v12  ;;  %v649_v13 = vld [vmem:[#allocation5 + $0x6e8] sm:$0xff] }
  0xe7   : > { %761 = vmatmul.mubr.f32.vlgmr.msra.gmra.mrb[0].mxu1 %v300_v48  ;;  %v595_v48 = vld [vmem:[#allocation5 + $0x538] sm:$0xff]  ;;  %v653_v31 = vld [vmem:[#allocation5 + $0x708] sm:$0xff] }
  0xe8   : > { %934 = vmatmul.mubr.f32.gmra.mrb[4].mxu0 %v318_v26  ;;  %2300 = vmatpush1.bf16.msra.mxu1 %v3169_v49  ;;  %v359_v26 = vld [vmem:[%s3141_s7 + $0x1d8] sm:$0xff]  ;;  %v2160_v62 = vpack.c.bf16 %v595_v48, %v593_v47  ;;  %v654_v47 = vld [vmem:[#allocation5 + $0x710] sm:$0xff] }
  0xe9   : > { %2135 = vmatpush1.bf16.msra.mxu0 %v2134_v27  ;;  %939 = vmatprep.mubr.f32.mxu0 %v327_v28  ;;  %v2152_v27 = vpack.c.bf16 %v587_v15, %v585_v14  ;;  %v584_v28 = vld [vmem:[#allocation5 + $0x4e0] sm:$0xff]  ;;  %v651_v14 = vld [vmem:[#allocation5 + $0x6f8] sm:$0xff]  ;;  %v390_v48 = vld [vmem:[%s3141_s7 + $0x2d0] sm:$0xff] }
  0xea   : > { %2137 = vmatprep.subr.bf16.mxu0 %v2136_v29  ;;  %766 = vmatprep.mubr.f32.mxu1 %v309_v50  ;;  %v586_v29 = vld [vmem:[#allocation5 + $0x4f0] sm:$0xff]  ;;  %v332_v50 = vld [vmem:[%s3141_s7 + $0x100] sm:$0xff]  ;;  %v383_v15 = vld [vmem:[%s3141_s7 + $0x298] sm:$0xff] }
  0xeb   : > { %2285 = vmatprep.subr.bf16.mxu1 %v3172_v51  ;;  %767 = vmatmul.mubr.f32.gmra.mrb[2].mxu1 %v308_v0  ;;  %v2154_v40 = vpack.c.bf16 %v586_v29, %v584_v28  ;;  %v594_v0 = vld [vmem:[#allocation5 + $0x530] sm:$0xff] }
  0xec   : > { %940 = vmatmul.mubr.f32.gmra.mrb[6].mxu0 %v326_v38  ;;  %2301 = vmatpush1.bf16.msra.mxu1 %v3178_v1  ;;  %v638_v38 = vld [vmem:[#allocation5 + $0x690] sm:$0xff]  ;;  %v2162_v12 = vpack.c.bf16 %v594_v0, %v592_v63  ;;  %v373_v0 = vld [vmem:[%s3141_s7 + $0x248] sm:$0xff] }
  0xed   : > { %2139 = vmatpush1.bf16.msra.mxu0 %v2138_v39  ;;  %945 = vmatprep.mubr.f32.mxu0 %v335_v42  ;;  %v358_v39 = vld [vmem:[%s3141_s7 + $0x1d0] sm:$0xff]  ;;  %v643_v42 = vld [vmem:[#allocation5 + $0x6b8] sm:$0xff]  ;;  %v3208_v52 = vpack.c.bf16 %v638_v38, %v636_v37  ;;  %v600_v38 = vld [vmem:[#allocation5 + $0x560] sm:$0xff] }
  0xee   : > { %2141 = vmatprep.subr.bf16.mxu0 %v2140_v43  ;;  %772 = vmatprep.mubr.f32.mxu1 %v317_v2  ;;  %v367_v43 = vld [vmem:[%s3141_s7 + $0x218] sm:$0xff]  ;;  %v597_v2 = vld [vmem:[#allocation5 + $0x548] sm:$0xff]  ;;  %v650_v28 = vld [vmem:[#allocation5 + $0x6f0] sm:$0xff] }
  0xef   : > { %2286 = vmatprep.subr.bf16.mxu1 %v3182_v3  ;;  %773 = vmatmul.mubr.f32.gmra.mrb[4].mxu1 %v316_v16  ;;  %v2164_v16 = vpack.c.bf16 %v599_v4, %v597_v2  ;;  %v382_v29 = vld [vmem:[%s3141_s7 + $0x290] sm:$0xff]  ;;  %v656_v4 = vld [vmem:[#allocation5 + $0x720] sm:$0xff] }
  0xf0   : > { %946 = vmatmul.mubr.f32.gmra.mrb[8].mxu0 %v334_v54  ;;  %2302 = vmatpush1.bf16.msra.mxu1 %v3188_v17  ;;  %v3212_v54 = vpack.c.bf16 %v643_v42, %v641_v41  ;;  %v607_v41 = vld [vmem:[#allocation5 + $0x598] sm:$0xff]  ;;  %v356_v42 = vld [vmem:[%s3141_s7 + $0x1c0] sm:$0xff] }
  0xf1   : > { %2143 = vmatpush1.bf16.msra.mxu0 %v2142_v55  ;;  %951 = vmatprep.mubr.f32.mxu0 %v343_v58  ;;  %v640_v55 = vld [vmem:[#allocation5 + $0x6a0] sm:$0xff]  ;;  %v2158_v58 = vpack.c.bf16 %v590_v46, %v588_v45 }
  0xf2   : > { %2145 = vmatprep.subr.bf16.mxu0 %v2144_v59  ;;  %778 = vmatprep.mubr.f32.mxu1 %v325_v18  ;;  %v645_v59 = vld [vmem:[#allocation5 + $0x6c8] sm:$0xff]  ;;  %v596_v18 = vld [vmem:[#allocation5 + $0x540] sm:$0xff] }
  0xf3   : > { %2287 = vmatprep.subr.bf16.mxu1 %v3192_v19  ;;  %779 = vmatmul.mubr.f32.gmra.mrb[6].mxu1 %v324_v32  ;;  %v3222_v8 = vpack.c.bf16 %v647_v60, %v645_v59  ;;  %v2166_v30 = vpack.c.bf16 %v598_v20, %v596_v18  ;;  %v655_v32 = vld [vmem:[#allocation5 + $0x718] sm:$0xff]  ;;  %v652_v46 = vld [vmem:[#allocation5 + $0x700] sm:$0xff]  ;;  %v606_v59 = vld [vmem:[#allocation5 + $0x590] sm:$0xff] }
  0xf4   : > { %952 = vmatmul.mubr.f32.gmra.mrb[10].mxu0 %v342_v6  ;;  %2303 = vmatpush1.bf16.msra.mxu1 %v3198_v33  ;;  %v3218_v6 = vpack.c.bf16 %v642_v56, %v640_v55  ;;  %v3242_v45 = vpack.c.bf16 %v655_v32, %v653_v31  ;;  %v659_v55 = vld [vmem:[#allocation5 + $0x738] sm:$0xff]  ;;  %v609_v60 = vld [vmem:[#allocation5 + $0x5a8] sm:$0xff]  ;;  %v3248_v63 = vpack.c.bf16 %v654_v47, %v652_v46  ;;  %v372_v20 = vld [vmem:[%s3141_s7 + $0x240] sm:$0xff] }
  0xf5   : > { %2147 = vmatpush1.bf16.msra.mxu0 %v2146_v7  ;;  %957 = vmatprep.mubr.f32.mxu0 %v351_v10  ;;  %v349_v7 = vld [vmem:[%s3141_s7 + $0x188] sm:$0xff]  ;;  %v646_v10 = vld [vmem:[#allocation5 + $0x6d0] sm:$0xff]  ;;  %v399_v56 = vld [vmem:[%s3141_s7 + $0x318] sm:$0xff] }
  0xf6   : > { %2149 = vmatprep.subr.bf16.mxu0 %v2148_v11  ;;  %784 = vmatprep.mubr.f32.mxu1 %v333_v34  ;;  %v374_v11 = vld [vmem:[%s3141_s7 + $0x250] sm:$0xff]  ;;  %v3228_v24 = vpack.c.bf16 %v646_v10, %v644_v9  ;;  %v391_v34 = vld [vmem:[%s3141_s7 + $0x2d8] sm:$0xff]  ;;  %v661_v10 = vld [vmem:[#allocation5 + $0x748] sm:$0xff] }
  0xf7   : > { %2288 = vmatprep.subr.bf16.mxu1 %v3202_v36  ;;  %785 = vmatmul.mubr.f32.gmra.mrb[8].mxu1 %v332_v50  ;;  %v615_v18 = vld [vmem:[#allocation5 + $0x5d8] sm:$0xff]  ;;  %v664_v47 = vld [vmem:[#allocation5 + $0x760] sm:$0xff] }
  0xf8   : > { %958 = vmatmul.mubr.f32.gmra.mrb[12].mxu0 %v350_v22  ;;  %2304 = vmatpush1.bf16.msra.mxu1 %v3208_v52  ;;  %v603_v22 = vld [vmem:[#allocation5 + $0x578] sm:$0xff] }
  0xf9   : > { %2151 = vmatpush1.bf16.msra.mxu0 %v2150_v23  ;;  %963 = vmatprep.mubr.f32.mxu0 %v359_v26  ;;  %v348_v23 = vld [vmem:[%s3141_s7 + $0x180] sm:$0xff]  ;;  %v3232_v26 = vpack.c.bf16 %v651_v14, %v649_v13  ;;  %v2168_v37 = vpack.c.bf16 %v603_v22, %v601_v21  ;;  %v381_v22 = vld [vmem:[%s3141_s7 + $0x288] sm:$0xff]  ;;  %v667_v31 = vld [vmem:[#allocation5 + $0x778] sm:$0xff] }
  0xfa   : > { %2153 = vmatprep.subr.bf16.mxu0 %v2152_v27  ;;  %790 = vmatprep.mubr.f32.mxu1 %v341_v53  ;;  %v648_v27 = vld [vmem:[#allocation5 + $0x6e0] sm:$0xff]  ;;  %v657_v53 = vld [vmem:[#allocation5 + $0x728] sm:$0xff]  ;;  %v415_v32 = vld [vmem:[%s3141_s7 + $0x398] sm:$0xff] }
  0xfb   : > { %2289 = vmatprep.subr.bf16.mxu1 %v3212_v54  ;;  %791 = vmatmul.mubr.f32.gmra.mrb[10].mxu1 %v340_v5  ;;  %v3252_v2 = vpack.c.bf16 %v659_v55, %v657_v53  ;;  %v658_v5 = vld [vmem:[#allocation5 + $0x730] sm:$0xff]  ;;  %v608_v14 = vld [vmem:[#allocation5 + $0x5a0] sm:$0xff]  ;;  %v669_v55 = vld [vmem:[#allocation5 + $0x788] sm:$0xff] }
  0xfc   : > { %964 = vmatmul.mubr.f32.gmra.mrb[14].mxu0 %v358_v39  ;;  %2305 = vmatpush1.bf16.msra.mxu1 %v3218_v6  ;;  %v602_v39 = vld [vmem:[#allocation5 + $0x570] sm:$0xff]  ;;  %v3258_v21 = vpack.c.bf16 %v658_v5, %v656_v4  ;;  %v668_v5 = vld [vmem:[#allocation5 + $0x780] sm:$0xff] }
  0xfd   : > { %2155 = vmatpush1.bf16.msra.mxu0 %v2154_v40  ;;  %969 = vmatprep.mubr.f32.mxu0 %v367_v43  ;;  %v605_v40 = vld [vmem:[#allocation5 + $0x588] sm:$0xff]  ;;  %v3238_v43 = vpack.c.bf16 %v650_v28, %v648_v27  ;;  %v2170_v50 = vpack.c.bf16 %v602_v39, %v600_v38  ;;  %v662_v27 = vld [vmem:[#allocation5 + $0x750] sm:$0xff] }
  0xfe   : > { %2157 = vmatprep.subr.bf16.mxu0 %v2156_v44  ;;  %796 = vmatprep.mubr.f32.mxu1 %v349_v7  ;;  %v365_v44 = vld [vmem:[%s3141_s7 + $0x208] sm:$0xff]  ;;  %v398_v7 = vld [vmem:[%s3141_s7 + $0x310] sm:$0xff] }
  0xff   : > { %2290 = vmatprep.subr.bf16.mxu1 %v3222_v8  ;;  %797 = vmatmul.mubr.f32.gmra.mrb[12].mxu1 %v348_v23  ;;  %v406_v28 = vld [vmem:[%s3141_s7 + $0x350] sm:$0xff]  ;;  %v617_v39 = vld [vmem:[#allocation5 + $0x5e8] sm:$0xff] }
 0x100   : > { %970 = vmatmul.mubr.f32.gmra.mrb[16].mxu0 %v366_v57  ;;  %2306 = vmatpush1.bf16.msra.mxu1 %v3228_v24  ;;  %v2172_v57 = vpack.c.bf16 %v607_v41, %v605_v40  ;;  %v614_v38 = vld [vmem:[#allocation5 + $0x5d0] sm:$0xff]  ;;  %v619_v40 = vld [vmem:[#allocation5 + $0x5f8] sm:$0xff]  ;;  %v380_v41 = vld [vmem:[%s3141_s7 + $0x280] sm:$0xff] }
 0x101   : > { %2159 = vmatpush1.bf16.msra.mxu0 %v2158_v58  ;;  %975 = vmatprep.mubr.f32.mxu0 %v375_v61  ;;  %v604_v58 = vld [vmem:[#allocation5 + $0x580] sm:$0xff]  ;;  %v611_v61 = vld [vmem:[#allocation5 + $0x5b8] sm:$0xff] }
 0x102   : > { %2161 = vmatprep.subr.bf16.mxu0 %v2160_v62  ;;  %802 = vmatprep.mubr.f32.mxu1 %v357_v25  ;;  %v364_v62 = vld [vmem:[%s3141_s7 + $0x200] sm:$0xff]  ;;  %v2174_v9 = vpack.c.bf16 %v606_v59, %v604_v58  ;;  %v2176_v13 = vpack.c.bf16 %v611_v61, %v609_v60  ;;  %v2184_v58 = vpack.c.bf16 %v619_v40, %v617_v39  ;;  %v618_v60 = vld [vmem:[#allocation5 + $0x5f0] sm:$0xff]  ;;  %v681_v39 = vld [vmem:[#allocation5 + $0x7e8] sm:$0xff] }
 0x103   : > { %2291 = vmatprep.subr.bf16.mxu1 %v3232_v26  ;;  %803 = vmatmul.mubr.f32.gmra.mrb[14].mxu1 %v356_v42  ;;  %v660_v25 = vld [vmem:[#allocation5 + $0x740] sm:$0xff]  ;;  %v683_v40 = vld [vmem:[#allocation5 + $0x7f8] sm:$0xff] }
 0x104   : > { %976 = vmatmul.mubr.f32.gmra.mrb[18].mxu0 %v374_v11  ;;  %2307 = vmatpush1.bf16.msra.mxu1 %v3238_v43  ;;  %v663_v11 = vld [vmem:[#allocation5 + $0x758] sm:$0xff]  ;;  %v3268_v42 = vpack.c.bf16 %v662_v27, %v660_v25  ;;  %v616_v59 = vld [vmem:[#allocation5 + $0x5e0] sm:$0xff]  ;;  %v677_v27 = vld [vmem:[#allocation5 + $0x7c8] sm:$0xff] }
 0x105   : > { %2163 = vmatpush1.bf16.msra.mxu0 %v2162_v12  ;;  %981 = vmatprep.mubr.f32.mxu0 %v383_v15  ;;  %v407_v12 = vld [vmem:[%s3141_s7 + $0x358] sm:$0xff]  ;;  %v610_v15 = vld [vmem:[#allocation5 + $0x5b0] sm:$0xff]  ;;  %v3262_v23 = vpack.c.bf16 %v663_v11, %v661_v10  ;;  %v388_v61 = vld [vmem:[%s3141_s7 + $0x2c0] sm:$0xff]  ;;  %v2186_v10 = vpack.c.bf16 %v618_v60, %v616_v59 }
 0x106   : > { %2165 = vmatprep.subr.bf16.mxu0 %v2164_v16  ;;  %808 = vmatprep.mubr.f32.mxu1 %v365_v44  ;;  %v613_v16 = vld [vmem:[#allocation5 + $0x5c8] sm:$0xff]  ;;  %v304_v25 = vld [vmem:[%s3141_s7 + $0x20] sm:$0xff]  ;;  %v370_v59 = vld [vmem:[%s3141_s7 + $0x230] sm:$0xff] }
 0x107   : > { %2292 = vmatprep.subr.bf16.mxu1 %v3242_v45  ;;  %809 = vmatmul.mubr.f32.gmra.mrb[16].mxu1 %v364_v62  ;;  %v389_v44 = vld [vmem:[%s3141_s7 + $0x2c8] sm:$0xff]  ;;  %v379_v60 = vld [vmem:[%s3141_s7 + $0x278] sm:$0xff] }
 0x108   : > { %982 = vmatmul.mubr.f32.gmra.mrb[20].mxu0 %v382_v29  ;;  %2308 = vmatpush1.bf16.msra.mxu1 %v3248_v63  ;;  %v2178_v29 = vpack.c.bf16 %v610_v15, %v608_v14  ;;  %v673_v11 = vld [vmem:[#allocation5 + $0x7a8] sm:$0xff]  ;;  %v396_v14 = vld [vmem:[%s3141_s7 + $0x300] sm:$0xff] }
 0x109   : > { %2167 = vmatpush1.bf16.msra.mxu0 %v2166_v30  ;;  %987 = vmatprep.mubr.f32.mxu0 %v391_v34  ;;  %v665_v30 = vld [vmem:[#allocation5 + $0x768] sm:$0xff]  ;;  %v2180_v34 = vpack.c.bf16 %v615_v18, %v613_v16 }
 0x10a   : > { %2169 = vmatprep.subr.bf16.mxu0 %v2168_v37  ;;  %814 = vmatprep.mubr.f32.mxu1 %v373_v0  ;;  %v612_v37 = vld [vmem:[#allocation5 + $0x5c0] sm:$0xff]  ;;  %v3272_v46 = vpack.c.bf16 %v667_v31, %v665_v30  ;;  %v397_v0 = vld [vmem:[%s3141_s7 + $0x308] sm:$0xff] }
 0x10b   : > { %2293 = vmatprep.subr.bf16.mxu1 %v3252_v2  ;;  %815 = vmatmul.mubr.f32.gmra.mrb[18].mxu1 %v372_v20  ;;  %v2182_v53 = vpack.c.bf16 %v614_v38, %v612_v37  ;;  %v405_v16 = vld [vmem:[%s3141_s7 + $0x348] sm:$0xff]  ;;  %v672_v20 = vld [vmem:[#allocation5 + $0x7a0] sm:$0xff]  ;;  %v678_v38 = vld [vmem:[#allocation5 + $0x7d0] sm:$0xff] }
 0x10c   : > { %988 = vmatmul.mubr.f32.gmra.mrb[22].mxu0 %v390_v48  ;;  %2309 = vmatpush1.bf16.msra.mxu1 %v3258_v21  ;;  %v666_v48 = vld [vmem:[#allocation5 + $0x770] sm:$0xff]  ;;  %v404_v30 = vld [vmem:[%s3141_s7 + $0x340] sm:$0xff] }
 0x10d   : > { %2171 = vmatpush1.bf16.msra.mxu0 %v2170_v50  ;;  %993 = vmatprep.mubr.f32.mxu0 %v399_v56  ;;  %v414_v50 = vld [vmem:[%s3141_s7 + $0x390] sm:$0xff]  ;;  %v671_v56 = vld [vmem:[#allocation5 + $0x798] sm:$0xff]  ;;  %v3278_v62 = vpack.c.bf16 %v666_v48, %v664_v47  ;;  %v676_v37 = vld [vmem:[#allocation5 + $0x7c0] sm:$0xff]  ;;  %v3315_v48 = vpack.c.bf16 %v683_v40, %v681_v39 }
 0x10e   : > { %2173 = vmatprep.subr.bf16.mxu0 %v2172_v57  ;;  %820 = vmatprep.mubr.f32.mxu1 %v381_v22  ;;  %v423_v57 = vld [vmem:[%s3141_s7 + $0x3d8] sm:$0xff]  ;;  %v3282_v4 = vpack.c.bf16 %v671_v56, %v669_v55  ;;  %v674_v22 = vld [vmem:[#allocation5 + $0x7b0] sm:$0xff]  ;;  %v3311_v47 = vpack.c.bf16 %v678_v38, %v676_v37  ;;  %v329_v55 = vld [vmem:[%s3141_s7 + $0xe8] sm:$0xff] }
 0x10f   : > { %2294 = vmatprep.subr.bf16.mxu1 %v3262_v23  ;;  %821 = vmatmul.mubr.f32.gmra.mrb[20].mxu1 %v380_v41  ;;  %v3299_v31 = vpack.c.bf16 %v674_v22, %v672_v20  ;;  %v321_v41 = vld [vmem:[%s3141_s7 + $0xa8] sm:$0xff]  ;;  %v420_v56 = vld [vmem:[%s3141_s7 + $0x3c0] sm:$0xff]  ;;  %v427_v20 = vld [vmem:[%s3141_s7 + $0x3f8] sm:$0xff] }
 0x110   : > { %994 = vmatmul.mubr.f32.gmra.mrb[24].mxu0 %v398_v7  ;;  %2310 = vmatpush1.bf16.msra.mxu1 %v3268_v42  ;;  %v670_v7 = vld [vmem:[#allocation5 + $0x790] sm:$0xff]  ;;  %v384_v22 = vld [vmem:[%s3141_s7 + $0x2a0] sm:$0xff]  ;;  %v339_v38 = vld [vmem:[%s3141_s7 + $0x138] sm:$0xff] }
 0x111   : > { %2175 = vmatpush1.bf16.msra.mxu0 %v2174_v9  ;;  %999 = vmatprep.mubr.f32.mxu0 %v407_v12  ;;  %v422_v9 = vld [vmem:[%s3141_s7 + $0x3d0] sm:$0xff]  ;;  %v675_v12 = vld [vmem:[#allocation5 + $0x7b8] sm:$0xff]  ;;  %v3288_v15 = vpack.c.bf16 %v670_v7, %v668_v5  ;;  %v344_v5 = vld [vmem:[%s3141_s7 + $0x160] sm:$0xff] }
 0x112   : > { %2177 = vmatprep.subr.bf16.mxu0 %v2176_v13  ;;  %826 = vmatprep.mubr.f32.mxu1 %v389_v44  ;;  %v305_v13 = vld [vmem:[%s3141_s7 + $0x28] sm:$0xff]  ;;  %v3292_v18 = vpack.c.bf16 %v675_v12, %v673_v11  ;;  %v412_v44 = vld [vmem:[%s3141_s7 + $0x380] sm:$0xff]  ;;  %v395_v7 = vld [vmem:[%s3141_s7 + $0x2f8] sm:$0xff] }
 0x113   : > { %2295 = vmatprep.subr.bf16.mxu1 %v3272_v46  ;;  %827 = vmatmul.mubr.f32.gmra.mrb[22].mxu1 %v388_v61  ;;  %v378_v61 = vld [vmem:[%s3141_s7 + $0x270] sm:$0xff]  ;;  %v360_v11 = vld [vmem:[%s3141_s7 + $0x1e0] sm:$0xff]  ;;  %v411_v12 = vld [vmem:[%s3141_s7 + $0x378] sm:$0xff] }
 0x114   : > { %1000 = vmatmul.mubr.f32.gmra.mrb[26].mxu0 %v406_v28  ;;  %2311 = vmatpush1.bf16.msra.mxu1 %v3278_v62  ;;  %v679_v28 = vld [vmem:[#allocation5 + $0x7d8] sm:$0xff]  ;;  %v330_v37 = vld [vmem:[%s3141_s7 + $0xf0] sm:$0xff] }
 0x115   : > { %2179 = vmatpush1.bf16.msra.mxu0 %v2178_v29  ;;  %1005 = vmatprep.mubr.f32.mxu0 %v415_v32  ;;  %v313_v29 = vld [vmem:[%s3141_s7 + $0x68] sm:$0xff]  ;;  %v347_v39 = vld [vmem:[%s3141_s7 + $0x178] sm:$0xff]  ;;  %v346_v40 = vld [vmem:[%s3141_s7 + $0x170] sm:$0xff] }
 0x116   : > { %2181 = vmatprep.subr.bf16.mxu0 %v2180_v34  ;;  %832 = vmatprep.mubr.f32.mxu1 %v397_v0  ;;  %v413_v32 = vld [vmem:[%s3141_s7 + $0x388] sm:$0xff]  ;;  %v3303_v34 = vpack.c.bf16 %v679_v28, %v677_v27  ;;  %v387_v0 = vld [vmem:[%s3141_s7 + $0x2b8] sm:$0xff]  ;;  %v306_v28 = vld [vmem:[%s3141_s7 + $0x30] sm:$0xff] }
 0x117   : > { %2296 = vmatprep.subr.bf16.mxu1 %v3282_v4  ;;  %833 = vmatmul.mubr.f32.gmra.mrb[24].mxu1 %v396_v14  ;;  %v419_v14 = vld [vmem:[%s3141_s7 + $0x3b8] sm:$0xff]  ;;  %v409_v27 = vld [vmem:[%s3141_s7 + $0x368] sm:$0xff] }
 0x118   : > { %1006 = vmatmul.mubr.f32.gmra.mrb[28].mxu0 %v414_v50  ;;  %2312 = vmatpush1.bf16.msra.mxu1 %v3288_v15  ;;  %v680_v50 = vld [vmem:[#allocation5 + $0x7e0] sm:$0xff] }
 0x119   : > { %2183 = vmatpush1.bf16.msra.mxu0 %v2182_v53  ;;  %1011 = vmatprep.mubr.f32.mxu0 %v423_v57  ;;  %v682_v53 = vld [vmem:[#allocation5 + $0x7f0] sm:$0xff] }
 0x11a   : > { %2185 = vmatprep.subr.bf16.mxu0 %v2184_v58  ;;  %838 = vmatprep.mubr.f32.mxu1 %v405_v16  ;;  %v3323_v57 = vpack.c.bf16 %v682_v53, %v680_v50  ;;  %v337_v58 = vld [vmem:[%s3141_s7 + $0x128] sm:$0xff]  ;;  %v376_v16 = vld [vmem:[%s3141_s7 + $0x260] sm:$0xff] }
 0x11b   : > { %2297 = vmatprep.subr.bf16.mxu1 %v3292_v18  ;;  %839 = vmatmul.mubr.f32.gmra.mrb[26].mxu1 %v404_v30  ;;  %v314_v30 = vld [vmem:[%s3141_s7 + $0x70] sm:$0xff] }
 0x11c   : > { %1012 = vmatmul.mubr.f32.gmra.mrb[30].mxu0 %v422_v9  ;;  %2313 = vmatpush1.bf16.msra.mxu1 %v3299_v31  ;;  %v352_v9 = vld [vmem:[%s3141_s7 + $0x1a0] sm:$0xff]  ;;  %v1549_v50 = vld [vmem:[#allocation8 + $0x88] sm:$0xff] }
 0x11d   : > { %2187 = vmatpush1.bf16.msra.mxu0 %v2186_v10  ;;  %1082 = vmatprep.mubr.f32.mxu0 %v305_v13  ;;  %v403_v10 = vld [vmem:[%s3141_s7 + $0x338] sm:$0xff]  ;;  %v368_v13 = vld [vmem:[%s3141_s7 + $0x220] sm:$0xff] }
 0x11e   : > { %2189 = vmatprep.subr.bf16.mxu0 %v3163_v35  ;;  %v312_v35 = vld [vmem:[%s3141_s7 + $0x60] sm:$0xff]  ;;  %844 = vmatprep.mubr.f32.mxu1 %v413_v32  ;;  %v322_v32 = vld [vmem:[%s3141_s7 + $0xb0] sm:$0xff] }
 0x11f   : > { %2298 = vmatprep.subr.bf16.mxu1 %v3303_v34  ;;  %845 = vmatmul.mubr.f32.gmra.mrb[28].mxu1 %v412_v44  ;;  %v354_v44 = vld [vmem:[%s3141_s7 + $0x1b0] sm:$0xff] }
 0x120   : > { %1083 = vmatmul.mubr.f32.vlgmr.msra.gmra.mrb[0].mxu0 %v304_v25  ;;  %2314 = vmatpush1.bf16.msra.mxu1 %v3311_v47  ;;  %v392_v25 = vld [vmem:[%s3141_s7 + $0x2e0] sm:$0xff] }
 0x121   : > { %2191 = vmatpush1.bf16.msra.mxu0 %v3169_v49  ;;  %1088 = vmatprep.mubr.f32.mxu0 %v313_v29  ;;  %v421_v49 = vld [vmem:[%s3141_s7 + $0x3c8] sm:$0xff]  ;;  %v315_v29 = vld [vmem:[%s3141_s7 + $0x78] sm:$0xff] }
 0x122   : > { %2193 = vmatprep.subr.bf16.mxu0 %v3172_v51  ;;  %v320_v51 = vld [vmem:[%s3141_s7 + $0xa0] sm:$0xff]  ;;  %850 = vmatprep.mubr.f32.mxu1 %v421_v49  ;;  %v362_v49 = vld [vmem:[%s3141_s7 + $0x1f0] sm:$0xff] }
 0x123   : > { %2299 = vmatprep.subr.bf16.mxu1 %v3315_v48  ;;  %851 = vmatmul.mubr.f32.gmra.mrb[30].mxu1 %v420_v56 }
 0x124   : > { %1089 = vmatmul.mubr.f32.gmra.mrb[2].mxu0 %v312_v35  ;;  %2315 = vmatpush1.bf16.msra.mxu1 %v3323_v57  ;;  %v338_v35 = vld [vmem:[%s3141_s7 + $0x130] sm:$0xff] }
 0x125   : > { %2195 = vmatpush1.bf16.msra.mxu0 %v3178_v1  ;;  %1094 = vmatprep.mubr.f32.mxu0 %v321_v41  ;;  %v371_v1 = vld [vmem:[%s3141_s7 + $0x238] sm:$0xff] }
 0x126   : > { %2197 = vmatprep.subr.bf16.mxu0 %v3182_v3  ;;  %v328_v3 = vld [vmem:[%s3141_s7 + $0xe0] sm:$0xff]  ;;  %1291 = vmatprep.mubr.f32.mxu1 %v371_v1  ;;  %v355_v41 = vld [vmem:[%s3141_s7 + $0x1b8] sm:$0xff] }
 0x127   : > { %1292 = vmatmul.mubr.f32.vlgmr.msra.gmra.mrb[32].mxu1 %v370_v59  ;;  %v1551_v1 = vld [vmem:[#allocation8 + $0x98] sm:$0xff] }
 0x128   : > { %1095 = vmatmul.mubr.f32.gmra.mrb[4].mxu0 %v320_v51  ;;  %1297 = vmatprep.mubr.f32.mxu1 %v379_v60  ;;  %v1532_v51 = vld [vmem:[#allocation8] sm:$0xff]  ;;  %v1535_v59 = vld [vmem:[#allocation8 + $0x18] sm:$0xff] }
 0x129   : > { %2199 = vmatpush1.bf16.msra.mxu0 %v3188_v17  ;;  %1100 = vmatprep.mubr.f32.mxu0 %v329_v55  ;;  %v336_v17 = vld [vmem:[%s3141_s7 + $0x120] sm:$0xff]  ;;  %v1533_v55 = vld [vmem:[#allocation8 + $0x8] sm:$0xff] }
 0x12a   : > { %2201 = vmatprep.subr.bf16.mxu0 %v3192_v19  ;;  %v345_v19 = vld [vmem:[%s3141_s7 + $0x168] sm:$0xff]  ;;  %v2254_v56 = vpack.c.bf16 %v1533_v55, %v1532_v51 }
 0x12b   : > { %1298 = vmatmul.mubr.f32.gmra.mrb[34].mxu1 %v378_v61 }
 0x12c   : > { %1101 = vmatmul.mubr.f32.gmra.mrb[6].mxu0 %v328_v3  ;;  %1303 = vmatprep.mubr.f32.mxu1 %v387_v0  ;;  %v1536_v0 = vld [vmem:[#allocation8 + $0x20] sm:$0xff] }
 0x12d   : > { %2203 = vmatpush1.bf16.msra.mxu0 %v3198_v33  ;;  %1106 = vmatprep.mubr.f32.mxu0 %v337_v58  ;;  %v353_v33 = vld [vmem:[%s3141_s7 + $0x1a8] sm:$0xff]  ;;  %v1534_v58 = vld [vmem:[#allocation8 + $0x10] sm:$0xff] }
 0x12e   : > { %2205 = vmatprep.subr.bf16.mxu0 %v3202_v36  ;;  %v386_v36 = vld [vmem:[%s3141_s7 + $0x2b0] sm:$0xff]  ;;  %v2258_v60 = vpack.c.bf16 %v1535_v59, %v1534_v58 }
 0x12f   : > { %1304 = vmatmul.mubr.f32.gmra.mrb[36].mxu1 %v386_v36  ;;  %v1554_v36 = vld [vmem:[#allocation8 + $0xb0] sm:$0xff] }
 0x130   : > { %1107 = vmatmul.mubr.f32.gmra.mrb[8].mxu0 %v336_v17  ;;  %1309 = vmatprep.mubr.f32.mxu1 %v395_v7  ;;  %v1552_v17 = vld [vmem:[#allocation8 + $0xa0] sm:$0xff]  ;;  %v1555_v7 = vld [vmem:[#allocation8 + $0xb8] sm:$0xff] }
 0x131   : > { %2207 = vmatpush1.bf16.msra.mxu0 %v3208_v52  ;;  %1112 = vmatprep.mubr.f32.mxu0 %v345_v19  ;;  %v361_v52 = vld [vmem:[%s3141_s7 + $0x1e8] sm:$0xff] }
 0x132   : > { %2209 = vmatprep.subr.bf16.mxu0 %v3212_v54  ;;  %v394_v54 = vld [vmem:[%s3141_s7 + $0x2f0] sm:$0xff] }
 0x133   : > { %1310 = vmatmul.mubr.f32.gmra.mrb[38].mxu1 %v394_v54  ;;  %v1553_v19 = vld [vmem:[#allocation8 + $0xa8] sm:$0xff]  ;;  %v1538_v54 = vld [vmem:[#allocation8 + $0x30] sm:$0xff] }
 0x134   : > { %1113 = vmatmul.mubr.f32.gmra.mrb[10].mxu0 %v344_v5  ;;  %1315 = vmatprep.mubr.f32.mxu1 %v403_v10  ;;  %v2260_v61 = vpack.c.bf16 %v1553_v19, %v1552_v17  ;;  %v1537_v5 = vld [vmem:[#allocation8 + $0x28] sm:$0xff]  ;;  %v1539_v10 = vld [vmem:[#allocation8 + $0x38] sm:$0xff] }
 0x135   : > { %2211 = vmatpush1.bf16.msra.mxu0 %v3218_v6  ;;  %1118 = vmatprep.mubr.f32.mxu0 %v353_v33  ;;  %v369_v6 = vld [vmem:[%s3141_s7 + $0x228] sm:$0xff]  ;;  %v2262_v33 = vpack.c.bf16 %v1537_v5, %v1536_v0  ;;  %v686_v5 = vlaneseq }
 0x136   : > { %2213 = vmatprep.subr.bf16.mxu0 %v3222_v8  ;;  %v402_v8 = vld [vmem:[%s3141_s7 + $0x330] sm:$0xff] }
 0x137   : > { %1316 = vmatmul.mubr.f32.gmra.mrb[40].mxu1 %v402_v8  ;;  %v1556_v8 = vld [vmem:[#allocation8 + $0xc0] sm:$0xff] }
 0x138   : > { %1119 = vmatmul.mubr.f32.gmra.mrb[12].mxu0 %v352_v9  ;;  %1321 = vmatprep.mubr.f32.mxu1 %v411_v12  ;;  %v1557_v12 = vld [vmem:[#allocation8 + $0xc8] sm:$0xff] }
 0x139   : > { %2215 = vmatpush1.bf16.msra.mxu0 %v3228_v24  ;;  %1124 = vmatprep.mubr.f32.mxu0 %v361_v52  ;;  %v377_v24 = vld [vmem:[%s3141_s7 + $0x268] sm:$0xff]  ;;  %v2264_v52 = vpack.c.bf16 %v1555_v7, %v1554_v36  ;;  %v687_v7 = vshrl.u32 %v686_v5, 7 }
 0x13a   : > { %2217 = vmatprep.subr.bf16.mxu0 %v3232_v26  ;;  %v410_v26 = vld [vmem:[%s3141_s7 + $0x370] sm:$0xff] }
 0x13b   : > { %1322 = vmatmul.mubr.f32.gmra.mrb[42].mxu1 %v410_v26  ;;  %v1540_v26 = vld [vmem:[#allocation8 + $0x40] sm:$0xff] }
 0x13c   : > { %1125 = vmatmul.mubr.f32.gmra.mrb[14].mxu0 %v360_v11  ;;  %1327 = vmatprep.mubr.f32.mxu1 %v419_v14  ;;  %v1541_v14 = vld [vmem:[#allocation8 + $0x48] sm:$0xff] }
 0x13d   : > { %2219 = vmatpush1.bf16.msra.mxu0 %v3238_v43  ;;  %1130 = vmatprep.mubr.f32.mxu0 %v369_v6  ;;  %v385_v43 = vld [vmem:[%s3141_s7 + $0x2a8] sm:$0xff]  ;;  %v2266_v6 = vpack.c.bf16 %v1539_v10, %v1538_v54  ;;  %v688_v10 = vsub.s32 0, %v687_v7 }
 0x13e   : > { %2221 = vmatprep.subr.bf16.mxu0 %v3242_v45  ;;  %v418_v45 = vld [vmem:[%s3141_s7 + $0x3b0] sm:$0xff] }
 0x13f   : > { %1328 = vmatmul.mubr.f32.gmra.mrb[44].mxu1 %v418_v45  ;;  %v1558_v45 = vld [vmem:[#allocation8 + $0xd0] sm:$0xff] }
 0x140   : > { %1131 = vmatmul.mubr.f32.gmra.mrb[16].mxu0 %v368_v13  ;;  %1333 = vmatprep.mubr.f32.mxu1 %v427_v20  ;;  %v1559_v20 = vld [vmem:[#allocation8 + $0xd8] sm:$0xff] }
 0x141   : > { %2223 = vmatpush1.bf16.msra.mxu0 %v3248_v63  ;;  %1136 = vmatprep.mubr.f32.mxu0 %v377_v24  ;;  %v393_v63 = vld [vmem:[%s3141_s7 + $0x2e8] sm:$0xff]  ;;  %v2268_v24 = vpack.c.bf16 %v1557_v12, %v1556_v8  ;;  %v692_v8 = vsub.s32 1, %v687_v7 }
 0x142   : > { %2225 = vmatprep.subr.bf16.mxu0 %v3252_v2  ;;  %v426_v2 = vld [vmem:[%s3141_s7 + $0x3f0] sm:$0xff] }
 0x143   : > { %1334 = vmatmul.mubr.f32.gmra.mrb[46].mxu1 %v426_v2  ;;  %v1542_v2 = vld [vmem:[#allocation8 + $0x50] sm:$0xff] }
 0x144   : > { %1137 = vmatmul.mubr.f32.gmra.mrb[18].mxu0 %v376_v16 }
 0x145   : > { %2227 = vmatpush1.bf16.msra.mxu0 %v3258_v21  ;;  %1142 = vmatprep.mubr.f32.mxu0 %v385_v43  ;;  %v401_v21 = vld [vmem:[%s3141_s7 + $0x328] sm:$0xff]  ;;  %v2270_v43 = vpack.c.bf16 %v1541_v14, %v1540_v26 }
 0x146   : > { %2229 = vmatprep.subr.bf16.mxu0 %v3262_v23  ;;  %v400_v23 = vld [vmem:[%s3141_s7 + $0x320] sm:$0xff] }
 0x148   : > { %1143 = vmatmul.mubr.f32.gmra.mrb[20].mxu0 %v384_v22 }
 0x149   : > { %2231 = vmatpush1.bf16.msra.mxu0 %v3268_v42  ;;  %1148 = vmatprep.mubr.f32.mxu0 %v393_v63  ;;  %v408_v42 = vld [vmem:[%s3141_s7 + $0x360] sm:$0xff]  ;;  %v2272_v63 = vpack.c.bf16 %v1559_v20, %v1558_v45 }
 0x14a   : > { %2233 = vmatprep.subr.bf16.mxu0 %v3272_v46  ;;  %v417_v46 = vld [vmem:[%s3141_s7 + $0x3a8] sm:$0xff] }
 0x14c   : > { %1149 = vmatmul.mubr.f32.gmra.mrb[22].mxu0 %v392_v25  ;;  %v1543_v25 = vld [vmem:[#allocation8 + $0x58] sm:$0xff] }
 0x14d   : > { %2235 = vmatpush1.bf16.msra.mxu0 %v3278_v62  ;;  %1154 = vmatprep.mubr.f32.mxu0 %v401_v21  ;;  %v416_v62 = vld [vmem:[%s3141_s7 + $0x3a0] sm:$0xff] }
 0x14e   : > { %2237 = vmatprep.subr.bf16.mxu0 %v3282_v4  ;;  %v425_v4 = vld [vmem:[%s3141_s7 + $0x3e8] sm:$0xff] }
 0x150   : > { %1155 = vmatmul.mubr.f32.gmra.mrb[24].mxu0 %v400_v23  ;;  %v2274_v23 = vpack.c.bf16 %v1543_v25, %v1542_v2 }
 0x151   : > { %2239 = vmatpush1.bf16.msra.mxu0 %v3288_v15  ;;  %1160 = vmatprep.mubr.f32.mxu0 %v409_v27  ;;  %v424_v15 = vld [vmem:[%s3141_s7 + $0x3e0] sm:$0xff] }
 0x152   : > { %2241 = vmatprep.subr.bf16.mxu0 %v3292_v18  ;;  %v307_v18 = vld [vmem:[%s3141_s7 + $0x38] sm:$0xff]  ;;  %v1560_v27 = vld [vmem:[#allocation8 + $0xe0] sm:$0xff] }
 0x154   : > { %1161 = vmatmul.mubr.f32.gmra.mrb[26].mxu0 %v408_v42  ;;  %v1561_v42 = vld [vmem:[#allocation8 + $0xe8] sm:$0xff] }
 0x155   : > { %2243 = vmatpush1.bf16.msra.mxu0 %v3299_v31  ;;  %1166 = vmatprep.mubr.f32.mxu0 %v417_v46  ;;  %v323_v31 = vld [vmem:[%s3141_s7 + $0xb8] sm:$0xff] }
 0x156   : > { %2245 = vmatprep.subr.bf16.mxu0 %v3303_v34  ;;  %v331_v34 = vld [vmem:[%s3141_s7 + $0xf8] sm:$0xff] }
 0x158   : > { %1167 = vmatmul.mubr.f32.gmra.mrb[28].mxu0 %v416_v62  ;;  %v2276_v62 = vpack.c.bf16 %v1561_v42, %v1560_v27 }
 0x159   : > { %2247 = vmatpush1.bf16.msra.mxu0 %v3311_v47  ;;  %1172 = vmatprep.mubr.f32.mxu0 %v425_v4  ;;  %v363_v47 = vld [vmem:[%s3141_s7 + $0x1f8] sm:$0xff]  ;;  %v1544_v4 = vld [vmem:[#allocation8 + $0x60] sm:$0xff] }
 0x15a   : > { %2249 = vmatprep.subr.bf16.mxu0 %v3315_v48  ;;  %v1548_v48 = vld [vmem:[#allocation8 + $0x80] sm:$0xff] }
 0x15b   : > { %v2252_v53 = vpack.c.bf16 %v1549_v50, %v1548_v48 }
 0x15c   : > { %1173 = vmatmul.mubr.f32.gmra.mrb[30].mxu0 %v424_v15  ;;  %v1545_v15 = vld [vmem:[#allocation8 + $0x68] sm:$0xff] }
 0x15d   : > { %2251 = vmatpush1.bf16.msra.mxu0 %v3323_v57  ;;  %1243 = vmatprep.mubr.f32.mxu0 %v307_v18  ;;  %v1550_v57 = vld [vmem:[#allocation8 + $0x90] sm:$0xff] }
 0x15e   : > { %2253 = vmatprep.subr.bf16.mxu1 %v2252_v53  ;;  %v2256_v3 = vpack.c.bf16 %v1551_v1, %v1550_v57 }
 0x15f   : > { %2255 = vmatpush3.bf16.msra.mxu1 %v2254_v56 }
 0x160   : > { %1244 = vmatmul.mubr.f32.vlgmr.msra.gmra.mrb[0].mxu0 %v306_v28  ;;  %2257 = vmatprep.subr.bf16.mxu1 %v2256_v3  ;;  %v2278_v28 = vpack.c.bf16 %v1545_v15, %v1544_v4 }
 0x161   : > { %1249 = vmatprep.mubr.f32.mxu0 %v315_v29  ;;  %v1562_v29 = vld [vmem:[#allocation8 + $0xf0] sm:$0xff] }
 0x163   : > { %2259 = vmatpush3.bf16.msra.mxu1 %v2258_v60 }
 0x164   : > { %1250 = vmatmul.mubr.f32.gmra.mrb[2].mxu0 %v314_v30  ;;  %2261 = vmatprep.subr.bf16.mxu1 %v2260_v61  ;;  %v1563_v30 = vld [vmem:[#allocation8 + $0xf8] sm:$0xff] }
 0x165   : > { %1255 = vmatprep.mubr.f32.mxu0 %v323_v31 }
 0x167   : > { %2263 = vmatpush3.bf16.msra.mxu1 %v2262_v33 }
 0x168   : > { %1256 = vmatmul.mubr.f32.gmra.mrb[4].mxu0 %v322_v32  ;;  %2265 = vmatprep.subr.bf16.mxu1 %v2264_v52  ;;  %v2280_v32 = vpack.c.bf16 %v1563_v30, %v1562_v29 }
 0x169   : > { %1261 = vmatprep.mubr.f32.mxu0 %v331_v34  ;;  %v1546_v34 = vld [vmem:[#allocation8 + $0x70] sm:$0xff] }
 0x16b   : > { %2267 = vmatpush3.bf16.msra.mxu1 %v2266_v6  ;;  %v684_v6 = vld [vmem:[#allocation7] sm:$0x3] }
 0x16c   : > { %1262 = vmatmul.mubr.f32.gmra.mrb[6].mxu0 %v330_v37  ;;  %2269 = vmatprep.subr.bf16.mxu1 %v2268_v24  ;;  %v1547_v37 = vld [vmem:[#allocation8 + $0x78] sm:$0xff]  ;;  %v3455_v26 = vrot.slane %v684_v6, %v688_v10  ;;  %v3457_v14 = vrot.slane %v684_v6, %v692_v8 }
 0x16d   : > { %1267 = vmatprep.mubr.f32.mxu0 %v339_v38 }
 0x16f   : > { %2271 = vmatpush3.bf16.msra.mxu1 %v2270_v43 }
 0x170   : > { %1268 = vmatmul.mubr.f32.gmra.mrb[8].mxu0 %v338_v35  ;;  %2273 = vmatprep.subr.bf16.mxu1 %v2272_v63  ;;  %v2282_v35 = vpack.c.bf16 %v1547_v37, %v1546_v34 }
 0x171   : > { %1273 = vmatprep.mubr.f32.mxu0 %v347_v39 }
 0x173   : > { %2275 = vmatpush3.bf16.msra.mxu1 %v2274_v23 }
 0x174   : > { %1274 = vmatmul.mubr.f32.gmra.mrb[10].mxu0 %v346_v40  ;;  %2277 = vmatprep.subr.bf16.mxu1 %v2276_v62 }
 0x175   : > { %1279 = vmatprep.mubr.f32.mxu0 %v355_v41 }
 0x177   : > { %2279 = vmatpush3.bf16.msra.mxu1 %v2278_v28 }
 0x178   : > { %1280 = vmatmul.mubr.f32.gmra.mrb[12].mxu0 %v354_v44  ;;  %2281 = vmatprep.subr.bf16.mxu1 %v2280_v32 }
 0x179   : > { %1285 = vmatprep.mubr.f32.mxu0 %v363_v47 }
 0x17b   : > { %2283 = vmatpush3.bf16.msra.mxu1 %v2282_v35 }
 0x17c   : > { %1286 = vmatmul.mubr.f32.gmra.mrb[14].mxu0 %v362_v49 }
 0x1ba   : > { %v3411_v9 = vpop.f32.mrb[0].mxu1 }
 0x1bb   : > { %v3413_v11 = vpop.f32.mrb[1].mxu1 }
 0x1be   : > { %v3415_v13 = vpop.f32.mrb[2].mxu1 }
 0x1bf   : > { %v3417_v16 = vpop.f32.mrb[3].mxu1 }
 0x1c2   : > { %v3419_v22 = vpop.f32.mrb[4].mxu1 }
 0x1c3   : > { %v3421_v21 = vpop.f32.mrb[5].mxu1 }
 0x1c6   : > { %v3423_v46 = vpop.f32.mrb[6].mxu1 }
 0x1c7   : > { %v3425_v18 = vpop.f32.mrb[7].mxu1 }
 0x1ca   : > { %v3427_v31 = vpop.f32.mrb[8].mxu1 }
 0x1cb   : > { %v3429_v38 = vpop.f32.mrb[9].mxu1 }
 0x1ce   : > { %v3431_v39 = vpop.f32.mrb[10].mxu1 }
 0x1cf   : > { %v3433_v40 = vpop.f32.mrb[11].mxu1 }
 0x1d2   : > { %v3435_v41 = vpop.f32.mrb[12].mxu1 }
 0x1d3   : > { %v3437_v44 = vpop.f32.mrb[13].mxu1 }
 0x1d6   : > { %v3439_v47 = vpop.f32.mrb[14].mxu1 }
 0x1d7   : > { %v3441_v49 = vpop.f32.mrb[15].mxu1 }
 0x1da   : > { %v810_v48 = vpop.f32.mrb[16].mxu1 }
 0x1db   : > { %v812_v50 = vpop.f32.mrb[17].mxu1  ;;  %v811_v20 = vadd.f32 %v810_v48, %v3455_v26 }
 0x1dc   : > { %v813_v63 = vadd.f32 %v812_v50, %v3457_v14 }
 0x1de   : > { %v816_v53 = vpop.f32.mrb[18].mxu1 }
 0x1df   : > { %v818_v51 = vpop.f32.mrb[19].mxu1  ;;  %v817_v27 = vadd.f32 %v816_v53, %v3455_v26 }
 0x1e0   : > { %v819_v4 = vadd.f32 %v818_v51, %v3457_v14 }
 0x1e2   : > { %v822_v55 = vpop.f32.mrb[20].mxu1 }
 0x1e3   : > { %v824_v56 = vpop.f32.mrb[21].mxu1  ;;  %v823_v37 = vadd.f32 %v822_v55, %v3455_v26 }
 0x1e4   : > { %v825_v50 = vadd.f32 %v824_v56, %v3457_v14 }
 0x1e6   : > { %v828_v57 = vpop.f32.mrb[22].mxu1 }
 0x1e7   : > { %v830_v1 = vpop.f32.mrb[23].mxu1 }
 0x1ea   : > { %v834_v3 = vpop.f32.mrb[24].mxu1 }
 0x1eb   : > { %v836_v58 = vpop.f32.mrb[25].mxu1 }
 0x1ee   : > { %v3443_v59 = vpop.f32.mrb[26].mxu1 }
 0x1ef   : > { %v3445_v60 = vpop.f32.mrb[27].mxu1 }
 0x1f2   : > { %v3447_v17 = vpop.f32.mrb[28].mxu1 }
 0x1f3   : > { %v3449_v19 = vpop.f32.mrb[29].mxu1 }
 0x1f6   : > { %v3451_v61 = vpop.f32.mrb[30].mxu1 }
 0x1f7   : > { %v3453_v0 = vpop.f32.mrb[31].mxu1 }
 0x1fa   : > { %v1293_v33 = vpop.f32.mrb[32].mxu1 }
 0x1fb   : > { %v1295_v36 = vpop.f32.mrb[33].mxu1 }
 0x1fe   : > { %v1299_v52 = vpop.f32.mrb[34].mxu1 }
 0x1ff   : > { %v1301_v54 = vpop.f32.mrb[35].mxu1 }
 0x202   : > { %v1305_v12 = vpop.f32.mrb[36].mxu1 }
 0x203   : > { %v1307_v24 = vpop.f32.mrb[37].mxu1 }
 0x206   : > { %v1311_v43 = vpop.f32.mrb[38].mxu1 }
 0x207   : > { %v1313_v45 = vpop.f32.mrb[39].mxu1 }
 0x20a   : > { %v1317_v2 = vpop.f32.mrb[40].mxu1 }
 0x20b   : > { %v1319_v25 = vpop.f32.mrb[41].mxu1 }
 0x20e   : > { %v1323_v28 = vpop.f32.mrb[42].mxu1 }
 0x20f   : > { %v1325_v30 = vpop.f32.mrb[43].mxu1 }
 0x212   : > { %v1329_v53 = vpop.f32.mrb[44].mxu1 }
 0x213   : > { %v1132_v23 = vpop.f32.mrb[16].mxu0  ;;  %v1331_v10 = vpop.f32.mrb[45].mxu1 }
 0x214   : > { %v2349_v42 = vadd.f32 %v1132_v23, %v811_v20  ;;  %v1134_v62 = vpop.f32.mrb[17].mxu0  ;;  %v831_v20 = vadd.f32 %v830_v1, %v3457_v14 }
 0x215   : > { %v2352_v15 = vadd.f32 %v1134_v62, %v813_v63 }
 0x216   : > { %v3463_v29 = vadd.f32 %v2349_v42, %v1293_v33  ;;  %v829_v33 = vadd.f32 %v828_v57, %v3455_v26  ;;  %v1335_v55 = vpop.f32.mrb[46].mxu1 }
 0x217   : > { %v3465_v32 = vadd.f32 %v2352_v15, %v1295_v36  ;;  %v1138_v34 = vpop.f32.mrb[18].mxu0 }
 0x218   : > { %v2355_v35 = vadd.f32 %v1138_v34, %v817_v27  ;;  %v1140_v48 = vpop.f32.mrb[19].mxu0  ;;  %v1337_v27 = vpop.f32.mrb[47].mxu1 }
 0x219   : > { %v2358_v5 = vadd.f32 %v1140_v48, %v819_v4  ;;  %v837_v4 = vadd.f32 %v836_v58, %v3457_v14 }
 0x21a   : > { %v3469_v7 = vadd.f32 %v2355_v35, %v1299_v52  ;;  %v835_v52 = vadd.f32 %v834_v3, %v3455_v26 }
 0x21b   : > { %v3471_v51 = vadd.f32 %v2358_v5, %v1301_v54  ;;  %v1144_v6 = vpop.f32.mrb[20].mxu0 }
 0x21c   : > { %v2361_v8 = vadd.f32 %v1144_v6, %v823_v37  ;;  %v1146_v36 = vpop.f32.mrb[21].mxu0  ;;  %v849_v6 = vadd.f32 %v3449_v19, %v3457_v14 }
 0x21d   : > { %v2364_v63 = vadd.f32 %v1146_v36, %v825_v50 }
 0x21e   : > { %v3475_v23 = vadd.f32 %v2361_v8, %v1305_v12  ;;  %v841_v12 = vadd.f32 %v3443_v59, %v3455_v26 }
 0x21f   : > { %v3477_v56 = vadd.f32 %v2364_v63, %v1307_v24  ;;  %v1150_v42 = vpop.f32.mrb[22].mxu0  ;;  %v843_v24 = vadd.f32 %v3445_v60, %v3457_v14 }
 0x220   : > { %v2367_v62 = vadd.f32 %v1150_v42, %v829_v33  ;;  %v1152_v54 = vpop.f32.mrb[23].mxu0 }
 0x221   : > { %v2370_v15 = vadd.f32 %v1152_v54, %v831_v20  ;;  %v855_v20 = vadd.f32 %v3453_v0, %v3457_v14 }
 0x222   : > { %v3481_v57 = vadd.f32 %v2367_v62, %v1311_v43  ;;  %v847_v43 = vadd.f32 %v3447_v17, %v3455_v26 }
 0x223   : > { %v3483_v34 = vadd.f32 %v2370_v15, %v1313_v45  ;;  %v1156_v1 = vpop.f32.mrb[24].mxu0 }
 0x224   : > { %v2373_v37 = vadd.f32 %v1156_v1, %v835_v52  ;;  %v1158_v35 = vpop.f32.mrb[25].mxu0 }
 0x225   : > { %v2376_v48 = vadd.f32 %v1158_v35, %v837_v4 }
 0x226   : > { %v3489_v3 = vadd.f32 %v2373_v37, %v1317_v2  ;;  %v853_v2 = vadd.f32 %v3451_v61, %v3455_v26  ;;  %v765_v61 = vadd.f32 %v3413_v11, %v3457_v14  ;;  %v775_v11 = vadd.f32 %v3419_v22, %v3455_v26 }
 0x227   : > { %v3491_v50 = vadd.f32 %v2376_v48, %v1319_v25  ;;  %v1162_v58 = vpop.f32.mrb[26].mxu0 }
 0x228   : > { %v2379_v45 = vadd.f32 %v1162_v58, %v841_v12  ;;  %v1164_v5 = vpop.f32.mrb[27].mxu0  ;;  %v771_v12 = vadd.f32 %v3417_v16, %v3457_v14  ;;  %v781_v16 = vadd.f32 %v3423_v46, %v3455_v26  ;;  %v789_v46 = vadd.f32 %v3429_v38, %v3457_v14 }
 0x229   : > { %v2382_v59 = vadd.f32 %v1164_v5, %v843_v24 }
 0x22a   : > { %v3497_v33 = vadd.f32 %v2379_v45, %v1323_v28 }
 0x22b   : > { %v3499_v8 = vadd.f32 %v2382_v59, %v1325_v30  ;;  %v1168_v60 = vpop.f32.mrb[28].mxu0  ;;  %v763_v30 = vadd.f32 %v3411_v9, %v3455_v26  ;;  %v783_v59 = vadd.f32 %v3425_v18, %v3457_v14 }
 0x22c   : > { %v2385_v25 = vadd.f32 %v1168_v60, %v847_v43  ;;  %v1170_v36 = vpop.f32.mrb[29].mxu0 }
 0x22d   : > { %v2388_v17 = vadd.f32 %v1170_v36, %v849_v6 }
 0x22e   : > { %v3505_v63 = vadd.f32 %v2385_v25, %v1329_v53 }
 0x22f   : > { %v3507_v42 = vadd.f32 %v2388_v17, %v1331_v10  ;;  %v1174_v19 = vpop.f32.mrb[30].mxu0  ;;  %v769_v10 = vadd.f32 %v3415_v13, %v3455_v26  ;;  %v1891_v17 = vmul.f32 -1.442695, %v3463_v29  ;;  %v795_v29 = vadd.f32 %v3433_v40, %v3457_v14 }
 0x230   : > { %v2391_v52 = vadd.f32 %v1174_v19, %v853_v2  ;;  %v1176_v28 = vpop.f32.mrb[31].mxu0  ;;  %v801_v40 = vadd.f32 %v3437_v44, %v3457_v14  ;;  %v807_v44 = vadd.f32 %v3441_v49, %v3457_v14 }
 0x231   : > { %v2394_v62 = vadd.f32 %v1176_v28, %v855_v20  ;;  %v787_v20 = vadd.f32 %v3427_v31, %v3455_v26 }
 0x232   : > { %v3511_v54 = vadd.f32 %v2391_v52, %v1335_v55 }
 0x233   : > { %v3515_v4 = vadd.f32 %v2394_v62, %v1337_v27  ;;  %v1245_v0 = vpop.f32.mrb[0].mxu0  ;;  %v777_v27 = vadd.f32 %v3421_v21, %v3457_v14 }
 0x234   : > { %v2317_v15 = vadd.f32 %v1245_v0, %v763_v30  ;;  %v1247_v53 = vpop.f32.mrb[1].mxu0  ;;  %v793_v0 = vadd.f32 %v3431_v39, %v3455_v26  ;;  %v799_v39 = vadd.f32 %v3435_v41, %v3455_v26  ;;  %v805_v41 = vadd.f32 %v3439_v47, %v3455_v26 }
 0x235   : > { %v2319_v1 = vadd.f32 %v1247_v53, %v765_v61 }
 0x236   : > { %v1875_v35 = vmul.f32 -1.442695, %v2317_v15 }
 0x237   : > { %v1251_v37 = vpop.f32.mrb[2].mxu0  ;;  %v1876_v24 = vmul.f32 -1.442695, %v2319_v1 }
 0x238   : > { %v2321_v9 = vadd.f32 %v1251_v37, %v769_v10  ;;  %v1253_v55 = vpop.f32.mrb[3].mxu0  ;;  %2539 = vpow2.f32 %v1875_v35  ;;  %v1892_v35 = vmul.f32 -1.442695, %v3465_v32 }
 0x239   : > { %v2323_v48 = vadd.f32 %v1253_v55, %v771_v12  ;;  %2541 = vpow2.f32 %v1876_v24 }
 0x23a   : > { %v1877_v43 = vmul.f32 -1.442695, %v2321_v9 }
 0x23b   : > { %v1257_v58 = vpop.f32.mrb[4].mxu0  ;;  %v1878_v6 = vmul.f32 -1.442695, %v2323_v48 }
 0x23c   : > { %v2325_v45 = vadd.f32 %v1257_v58, %v775_v11  ;;  %v1259_v13 = vpop.f32.mrb[5].mxu0  ;;  %2543 = vpow2.f32 %v1877_v43 }
 0x23d   : > { %v2327_v5 = vadd.f32 %v1259_v13, %v777_v27  ;;  %2545 = vpow2.f32 %v1878_v6 }
 0x23e   : > { %v1879_v60 = vmul.f32 -1.442695, %v2325_v45 }
 0x23f   : > { %v1263_v2 = vpop.f32.mrb[6].mxu0  ;;  %v1880_v22 = vmul.f32 -1.442695, %v2327_v5 }
 0x240   : > { %v2329_v25 = vadd.f32 %v1263_v2, %v781_v16  ;;  %v1265_v21 = vpop.f32.mrb[7].mxu0  ;;  %2547 = vpow2.f32 %v1879_v60 }
 0x241   : > { %v2331_v36 = vadd.f32 %v1265_v21, %v783_v59  ;;  %2549 = vpow2.f32 %v1880_v22 }
 0x242   : > { %v1881_v19 = vmul.f32 -1.442695, %v2329_v25  ;;  %v2540_v61 = vpop.eup %2539  ;;  %2551 = vpow2.f32 %v1891_v17 }
 0x243   : > { %v1269_v52 = vpop.f32.mrb[8].mxu0  ;;  %v1882_v18 = vmul.f32 -1.442695, %v2331_v36  ;;  %v2542_v31 = vpop.eup %2541  ;;  %v1436_v15 = vadd.f32 1.0, %v2540_v61 }
 0x244   : > { %v2333_v28 = vadd.f32 %v1269_v52, %v787_v20  ;;  %v1271_v62 = vpop.f32.mrb[9].mxu0  ;;  %2553 = vpow2.f32 %v1881_v19  ;;  %v1437_v1 = vadd.f32 1.0, %v2542_v31 }
 0x245   : > { %v2335_v30 = vadd.f32 %v1271_v62, %v789_v46  ;;  %2555 = vpow2.f32 %v1882_v18 }
 0x246   : > { %v1883_v38 = vmul.f32 -1.442695, %v2333_v28  ;;  %2557 = vrcp.f32 %v1436_v15  ;;  %v2544_v55 = vpop.eup %2543  ;;  %v1893_v15 = vmul.f32 -1.442695, %v3469_v7  ;;  %v1898_v7 = vmul.f32 -1.442695, %v3483_v34 }
 0x247   : > { %v1275_v53 = vpop.f32.mrb[10].mxu0  ;;  %v1884_v10 = vmul.f32 -1.442695, %v2335_v30  ;;  %2559 = vrcp.f32 %v1437_v1  ;;  %v2546_v11 = vpop.eup %2545  ;;  %v1438_v27 = vadd.f32 1.0, %v2544_v55  ;;  %v1894_v30 = vmul.f32 -1.442695, %v3471_v51 }
 0x248   : > { %v2337_v12 = vadd.f32 %v1275_v53, %v793_v0  ;;  %v1277_v37 = vpop.f32.mrb[11].mxu0  ;;  %2561 = vpow2.f32 %v1883_v38  ;;  %v1439_v32 = vadd.f32 1.0, %v2546_v11  ;;  %v1896_v53 = vmul.f32 -1.442695, %v3477_v56 }
 0x249   : > { %v2339_v9 = vadd.f32 %v1277_v37, %v795_v29  ;;  %2563 = vpow2.f32 %v1884_v10  ;;  %v1895_v37 = vmul.f32 -1.442695, %v3475_v23  ;;  %v1900_v23 = vmul.f32 -1.442695, %v3491_v50 }
 0x24a   : > { %v1885_v24 = vmul.f32 -1.442695, %v2337_v12  ;;  %v2548_v45 = vpop.eup %2547  ;;  %2565 = vpow2.f32 %v1892_v35 }
 0x24b   : > { %v1281_v48 = vpop.f32.mrb[12].mxu0  ;;  %v2550_v5 = vpop.eup %2549  ;;  %v1886_v16 = vmul.f32 -1.442695, %v2339_v9  ;;  %v1440_v22 = vadd.f32 1.0, %v2548_v45 }
 0x24c   : > { %v2341_v58 = vadd.f32 %v1281_v48, %v799_v39  ;;  %v1283_v43 = vpop.f32.mrb[13].mxu0  ;;  %2567 = vpow2.f32 %v1885_v24  ;;  %v1441_v6 = vadd.f32 1.0, %v2550_v5  ;;  %v3547_v2 = vpop.eup %2551 }
 0x24d   : > { %v2343_v13 = vadd.f32 %v1283_v43, %v801_v40  ;;  %2569 = vrcp.f32 %v1439_v32  ;;  %v1897_v40 = vmul.f32 -1.442695, %v3481_v57  ;;  %v1452_v5 = vadd.f32 1.0, %v3547_v2 }
 0x24e   : > { %v1887_v59 = vmul.f32 -1.442695, %v2341_v58  ;;  %2571 = vrcp.f32 %v1438_v27  ;;  %v2554_v36 = vpop.eup %2553  ;;  %v1901_v2 = vmul.f32 -1.442695, %v3497_v33  ;;  %v1906_v33 = vmul.f32 -1.442695, %v3515_v4 }
 0x24f   : > { %v1287_v60 = vpop.f32.mrb[14].mxu0  ;;  %2573 = vrcp.f32 %v1441_v6  ;;  %v2556_v17 = vpop.eup %2555  ;;  %v1888_v47 = vmul.f32 -1.442695, %v2343_v13  ;;  %v1442_v19 = vadd.f32 1.0, %v2554_v36 }
 0x250   : > { %v2345_v25 = vadd.f32 %v1287_v60, %v805_v41  ;;  %v1289_v21 = vpop.f32.mrb[15].mxu0  ;;  %2575 = vpow2.f32 %v1886_v16  ;;  %v2558_v26 = vpop.eup %2557  ;;  %v1443_v46 = vadd.f32 1.0, %v2556_v17  ;;  %v1899_v41 = vmul.f32 -1.442695, %v3489_v3 }
 0x251   : > { %v2347_v20 = vadd.f32 %v1289_v21, %v807_v44  ;;  %2577 = vpow2.f32 %v1887_v59  ;;  %v2560_v14 = vpop.eup %2559  ;;  %v1902_v16 = vmul.f32 -1.442695, %v3499_v8  ;;  %v1904_v3 = vmul.f32 -1.442695, %v3507_v42 }
 0x252   : > { %v1889_v49 = vmul.f32 -1.442695, %v2345_v25  ;;  %2579 = vrcp.f32 %v1440_v22  ;;  %v2562_v52 = vpop.eup %2561  ;;  %1635 = vmatprep.mubr.f32.mxu1 %v2560_v14 }
 0x253   : > { %2581 = vrcp.f32 %v1443_v46  ;;  %v2564_v18 = vpop.eup %2563  ;;  %v1890_v28 = vmul.f32 -1.442695, %v2347_v20  ;;  %1636 = vmatmul.mubr.f32.vlgmr.msra.gmra.mrb[48].mxu1 %v2558_v26  ;;  %v1444_v31 = vadd.f32 1.0, %v2562_v52 }
 0x254   : > { %2583 = vpow2.f32 %v1888_v47  ;;  %v2566_v62 = vpop.eup %2565  ;;  %v1445_v61 = vadd.f32 1.0, %v2564_v18  ;;  %v1903_v47 = vmul.f32 -1.442695, %v3505_v63 }
 0x255   : > { %2585 = vpow2.f32 %v1889_v49  ;;  %v1453_v45 = vadd.f32 1.0, %v2566_v62 }
 0x256   : > { %v2568_v0 = vpop.eup %2567  ;;  %2587 = vrcp.f32 %v1442_v19  ;;  %v1905_v19 = vmul.f32 -1.442695, %v3511_v54 }
 0x257   : > { %v2570_v29 = vpop.eup %2569  ;;  %2589 = vrcp.f32 %v1445_v61  ;;  %v1446_v51 = vadd.f32 1.0, %v2568_v0 }
 0x258   : > { %v2572_v38 = vpop.eup %2571  ;;  %2591 = vpow2.f32 %v1890_v28  ;;  %1640 = vmatprep.mubr.f32.mxu1 %v2570_v29 }
 0x259   : > { %v2574_v1 = vpop.eup %2573  ;;  %2593 = vpow2.f32 %v1894_v30  ;;  %1641 = vmatmul.mubr.f32.gmra.mrb[50].mxu1 %v2572_v38 }
 0x25a   : > { %v2576_v10 = vpop.eup %2575  ;;  %2595 = vrcp.f32 %v1444_v31  ;;  %1645 = vmatprep.mubr.f32.mxu1 %v2574_v1 }
 0x25b   : > { %v2578_v12 = vpop.eup %2577  ;;  %2597 = vpow2.f32 %v1893_v15  ;;  %v1447_v35 = vadd.f32 1.0, %v2576_v10 }
 0x25c   : > { %v2580_v9 = vpop.eup %2579  ;;  %2599 = vpow2.f32 %v1896_v53  ;;  %v1448_v39 = vadd.f32 1.0, %v2578_v12 }
 0x25d   : > { %v2582_v55 = vpop.eup %2581  ;;  %2601 = vrcp.f32 %v1447_v35  ;;  %1646 = vmatmul.mubr.f32.gmra.mrb[52].mxu1 %v2580_v9 }
 0x25e   : > { %v2584_v56 = vpop.eup %2583  ;;  %2603 = vrcp.f32 %v1446_v51  ;;  %1650 = vmatprep.mubr.f32.mxu1 %v2582_v55 }
 0x25f   : > { %v2586_v24 = vpop.eup %2585  ;;  %2605 = vpow2.f32 %v1895_v37  ;;  %v1449_v48 = vadd.f32 1.0, %v2584_v56 }
 0x260   : > { %v2588_v11 = vpop.eup %2587  ;;  %2607 = vpow2.f32 %v1898_v7  ;;  %v1450_v58 = vadd.f32 1.0, %v2586_v24 }
 0x261   : > { %v2590_v27 = vpop.eup %2589  ;;  %2609 = vrcp.f32 %v1449_v48  ;;  %1651 = vmatmul.mubr.f32.gmra.mrb[54].mxu1 %v2588_v11 }
 0x262   : > { %v2592_v34 = vpop.eup %2591  ;;  %2611 = vrcp.f32 %v1448_v39  ;;  %1655 = vmatprep.mubr.f32.mxu1 %v2590_v27 }
 0x263   : > { %v2594_v43 = vpop.eup %2593  ;;  %2613 = vpow2.f32 %v1897_v40  ;;  %v1451_v32 = vadd.f32 1.0, %v2592_v34  ;;  %v3565_v34 = vld [vmem:[#allocation10] ss:$0 sm:$0xff] }
 0x264   : > { %v2596_v13 = vpop.eup %2595  ;;  %2615 = vpow2.f32 %v1900_v23  ;;  %v1455_v6 = vadd.f32 1.0, %v2594_v43 }
 0x265   : > { %v2598_v57 = vpop.eup %2597  ;;  %2617 = vrcp.f32 %v1451_v32  ;;  %1656 = vmatmul.mubr.f32.gmra.mrb[56].mxu1 %v2596_v13 }
 0x266   : > { %v2600_v50 = vpop.eup %2599  ;;  %2619 = vrcp.f32 %v1450_v58  ;;  %v1454_v60 = vadd.f32 1.0, %v2598_v57 }
 0x267   : > { %v2602_v44 = vpop.eup %2601  ;;  %2621 = vrcp.f32 %v1453_v45  ;;  %v1457_v8 = vadd.f32 1.0, %v2600_v50 }
 0x268   : > { %v2604_v59 = vpop.eup %2603  ;;  %2623 = vrcp.f32 %v1452_v5  ;;  %1660 = vmatprep.mubr.f32.mxu1 %v2602_v44 }
 0x269   : > { %v2606_v22 = vpop.eup %2605  ;;  %2625 = vpow2.f32 %v1899_v41  ;;  %1661 = vmatmul.mubr.f32.gmra.mrb[58].mxu1 %v2604_v59 }
 0x26a   : > { %v2608_v25 = vpop.eup %2607  ;;  %2627 = vpow2.f32 %v1902_v16  ;;  %v1456_v20 = vadd.f32 1.0, %v2606_v22 }
 0x26b   : > { %v2610_v21 = vpop.eup %2609  ;;  %2629 = vrcp.f32 %v1455_v6  ;;  %v1459_v49 = vadd.f32 1.0, %v2608_v25 }
 0x26c   : > { %v2612_v36 = vpop.eup %2611  ;;  %2631 = vrcp.f32 %v1454_v60  ;;  %1665 = vmatprep.mubr.f32.mxu1 %v2610_v21 }
 0x26d   : > { %v2614_v17 = vpop.eup %2613  ;;  %2633 = vpow2.f32 %v1901_v2  ;;  %1666 = vmatmul.mubr.f32.gmra.mrb[60].mxu1 %v2612_v36 }
 0x26e   : > { %v2616_v26 = vpop.eup %2615  ;;  %2635 = vpow2.f32 %v1904_v3  ;;  %v1458_v18 = vadd.f32 1.0, %v2614_v17 }
 0x26f   : > { %v2618_v46 = vpop.eup %2617  ;;  %2637 = vrcp.f32 %v1457_v8  ;;  %v1461_v28 = vadd.f32 1.0, %v2616_v26 }
 0x270   : > { %v2620_v42 = vpop.eup %2619  ;;  %2639 = vrcp.f32 %v1456_v20  ;;  %1670 = vmatprep.mubr.f32.mxu1 %v2618_v46 }
 0x271   : > { %v2622_v14 = vpop.eup %2621  ;;  %2641 = vpow2.f32 %v1903_v47  ;;  %1671 = vmatmul.mubr.f32.gmra.mrb[62].mxu1 %v2620_v42 }
 0x272   : > { %v2624_v52 = vpop.eup %2623  ;;  %2643 = vpow2.f32 %v1906_v33  ;;  %1675 = vmatprep.mubr.f32.mxu1 %v2622_v14 }
 0x273   : > { %v2626_v63 = vpop.eup %2625  ;;  %2645 = vrcp.f32 %v1459_v49 }
 0x274   : > { %v2628_v62 = vpop.eup %2627  ;;  %2647 = vpow2.f32 %v1905_v19  ;;  %v1460_v61 = vadd.f32 1.0, %v2626_v63 }
 0x275   : > { %v2630_v4 = vpop.eup %2629  ;;  %1676 = vmatmul.mubr.f32.gmra.mrb[64].mxu1 %v2624_v52  ;;  %2649 = vrcp.f32 %v1458_v18  ;;  %v1463_v31 = vadd.f32 1.0, %v2628_v62 }
 0x276   : > { %v2632_v30 = vpop.eup %2631  ;;  %1680 = vmatprep.mubr.f32.mxu1 %v2630_v4  ;;  %2651 = vrcp.f32 %v1461_v28 }
 0x277   : > { %v2634_v0 = vpop.eup %2633  ;;  %2653 = vrcp.f32 %v1460_v61 }
 0x278   : > { %v2636_v54 = vpop.eup %2635  ;;  %v1462_v38 = vadd.f32 1.0, %v2634_v0  ;;  %2655 = vrcp.f32 %v1463_v31 }
 0x279   : > { %v2638_v29 = vpop.eup %2637  ;;  %1681 = vmatmul.mubr.f32.gmra.mrb[66].mxu1 %v2632_v30  ;;  %v1465_v1 = vadd.f32 1.0, %v2636_v54 }
 0x27a   : > { %v2640_v15 = vpop.eup %2639  ;;  %1685 = vmatprep.mubr.f32.mxu1 %v2638_v29  ;;  %2657 = vrcp.f32 %v1462_v38 }
 0x27b   : > { %v2642_v53 = vpop.eup %2641  ;;  %2659 = vrcp.f32 %v1465_v1 }
 0x27c   : > { %v2644_v10 = vpop.eup %2643  ;;  %v1464_v12 = vadd.f32 1.0, %v2642_v53 }
 0x27d   : > { %v2646_v51 = vpop.eup %2645  ;;  %1686 = vmatmul.mubr.f32.gmra.mrb[68].mxu1 %v2640_v15  ;;  %v1467_v35 = vadd.f32 1.0, %v2644_v10 }
 0x27e   : > { %1690 = vmatprep.mubr.f32.mxu1 %v2646_v51  ;;  %v2648_v37 = vpop.eup %2647  ;;  %2661 = vrcp.f32 %v1464_v12 }
 0x27f   : > { %v2650_v9 = vpop.eup %2649  ;;  %v1466_v55 = vadd.f32 1.0, %v2648_v37  ;;  %2663 = vrcp.f32 %v1467_v35 }
 0x280   : > { %v2652_v7 = vpop.eup %2651 }
 0x281   : > { %1691 = vmatmul.mubr.f32.gmra.mrb[70].mxu1 %v2650_v9  ;;  %v2654_v56 = vpop.eup %2653  ;;  %2665 = vrcp.f32 %v1466_v55 }
 0x282   : > { %1695 = vmatprep.mubr.f32.mxu1 %v2652_v7  ;;  %v2656_v39 = vpop.eup %2655 }
 0x284   : > { %v2658_v24 = vpop.eup %2657 }
 0x285   : > { %1696 = vmatmul.mubr.f32.gmra.mrb[72].mxu1 %v2654_v56  ;;  %v2660_v40 = vpop.eup %2659 }
 0x286   : > { %1700 = vmatprep.mubr.f32.mxu1 %v2656_v39 }
 0x288   : > { %v2662_v48 = vpop.eup %2661 }
 0x289   : > { %1701 = vmatmul.mubr.f32.gmra.mrb[74].mxu1 %v2658_v24  ;;  %v2664_v11 = vpop.eup %2663 }
 0x28a   : > { %1705 = vmatprep.mubr.f32.mxu1 %v2660_v40 }
 0x28b   : > { %v2666_v23 = vpop.eup %2665 }
 0x28d   : > { %1706 = vmatmul.mubr.f32.gmra.mrb[76].mxu1 %v2662_v48 }
 0x28e   : > { %1710 = vmatprep.mubr.f32.mxu1 %v2664_v11 }
 0x291   : > { %1711 = vmatmul.mubr.f32.gmra.mrb[78].mxu1 %v2666_v23 }
 0x326   : > { %v1948_v27 = vpop.f32.mrb[48].mxu1 }
 0x327   : > { %v1949_v58 = vpop.f32.mrb[49].mxu1 }
 0x328   : > { %v1950_v43 = vadd.f32 %v1949_v58, %v1948_v27 }
 0x32a   : > { %v1638_v45 = vadd.f32 %v1950_v43, %v3565_v34 }
 0x32c   : > { %v1951_v32 = vpop.f32.mrb[50].mxu1  ;;  %1716 = vst [vmem:[%s3568_s26] sm:$0xff] %v1638_v45 }
 0x32d   : > { %v1952_v13 = vpop.f32.mrb[51].mxu1 }
 0x32e   : > { %v1953_v5 = vadd.f32 %v1952_v13, %v1951_v32 }
 0x330   : > { %v1643_v57 = vadd.f32 %v1953_v5, %v3565_v34  ;;  %v1954_v41 = vpop.f32.mrb[52].mxu1 }
 0x331   : > { %v1955_v50 = vpop.f32.mrb[53].mxu1 }
 0x332   : > { %1717 = vst [vmem:[%s3568_s26 + $0x8] sm:$0xff] %v1643_v57  ;;  %v1956_v16 = vadd.f32 %v1955_v50, %v1954_v41 }
 0x334   : > { %v1648_v44 = vadd.f32 %v1956_v16, %v3565_v34  ;;  %v1957_v6 = vpop.f32.mrb[54].mxu1 }
 0x335   : > { %v1958_v59 = vpop.f32.mrb[55].mxu1 }
 0x336   : > { %1718 = vst [vmem:[%s3568_s26 + $0x10] sm:$0xff] %v1648_v44  ;;  %v1959_v60 = vadd.f32 %v1958_v59, %v1957_v6 }
 0x338   : > { %v1653_v22 = vadd.f32 %v1959_v60, %v3565_v34  ;;  %v1960_v2 = vpop.f32.mrb[56].mxu1 }
 0x339   : > { %v1961_v25 = vpop.f32.mrb[57].mxu1 }
 0x33a   : > { %1719 = vst [vmem:[%s3568_s26 + $0x18] sm:$0xff] %v1653_v22  ;;  %v1962_v3 = vadd.f32 %v1961_v25, %v1960_v2 }
 0x33c   : > { %v1658_v21 = vadd.f32 %v1962_v3, %v3565_v34  ;;  %v1963_v8 = vpop.f32.mrb[58].mxu1 }
 0x33d   : > { %v1964_v36 = vpop.f32.mrb[59].mxu1 }
 0x33e   : > { %1720 = vst [vmem:[%s3568_s26 + $0x20] sm:$0xff] %v1658_v21  ;;  %v1965_v20 = vadd.f32 %v1964_v36, %v1963_v8 }
 0x340   : > { %v1663_v17 = vadd.f32 %v1965_v20, %v3565_v34  ;;  %v1966_v47 = vpop.f32.mrb[60].mxu1 }
 0x341   : > { %v1967_v26 = vpop.f32.mrb[61].mxu1 }
 0x342   : > { %1721 = vst [vmem:[%s3568_s26 + $0x28] sm:$0xff] %v1663_v17  ;;  %v1968_v33 = vadd.f32 %v1967_v26, %v1966_v47 }
 0x344   : > { %v1668_v46 = vadd.f32 %v1968_v33, %v3565_v34  ;;  %v1969_v49 = vpop.f32.mrb[62].mxu1 }
 0x345   : > { %v1970_v42 = vpop.f32.mrb[63].mxu1 }
 0x346   : > { %1722 = vst [vmem:[%s3568_s26 + $0x30] sm:$0xff] %v1668_v46  ;;  %v1971_v14 = vadd.f32 %v1970_v42, %v1969_v49 }
 0x348   : > { %v1673_v19 = vadd.f32 %v1971_v14, %v3565_v34  ;;  %v1972_v52 = vpop.f32.mrb[64].mxu1 }
 0x349   : > { %v1973_v18 = vpop.f32.mrb[65].mxu1 }
 0x34a   : > { %1723 = vst [vmem:[%s3568_s26 + $0x38] sm:$0xff] %v1673_v19  ;;  %v1974_v63 = vadd.f32 %v1973_v18, %v1972_v52 }
 0x34c   : > { %v1678_v28 = vadd.f32 %v1974_v63, %v3565_v34  ;;  %v1975_v62 = vpop.f32.mrb[66].mxu1 }
 0x34d   : > { %v1976_v4 = vpop.f32.mrb[67].mxu1 }
 0x34e   : > { %1724 = vst [vmem:[%s3568_s26 + $0x40] sm:$0xff] %v1678_v28  ;;  %v1977_v30 = vadd.f32 %v1976_v4, %v1975_v62 }
 0x350   : > { %v1683_v61 = vadd.f32 %v1977_v30, %v3565_v34  ;;  %v1978_v0 = vpop.f32.mrb[68].mxu1 }
 0x351   : > { %v1979_v31 = vpop.f32.mrb[69].mxu1 }
 0x352   : > { %1725 = vst [vmem:[%s3568_s26 + $0x48] sm:$0xff] %v1683_v61  ;;  %v1980_v54 = vadd.f32 %v1979_v31, %v1978_v0 }
 0x354   : > { %v1688_v29 = vadd.f32 %v1980_v54, %v3565_v34  ;;  %v1981_v15 = vpop.f32.mrb[70].mxu1 }
 0x355   : > { %v1982_v38 = vpop.f32.mrb[71].mxu1 }
 0x356   : > { %1726 = vst [vmem:[%s3568_s26 + $0x50] sm:$0xff] %v1688_v29  ;;  %v1983_v53 = vadd.f32 %v1982_v38, %v1981_v15 }
 0x358   : > { %v1693_v1 = vadd.f32 %v1983_v53, %v3565_v34  ;;  %v1984_v10 = vpop.f32.mrb[72].mxu1 }
 0x359   : > { %v1985_v51 = vpop.f32.mrb[73].mxu1 }
 0x35a   : > { %1727 = vst [vmem:[%s3568_s26 + $0x58] sm:$0xff] %v1693_v1  ;;  %v1986_v12 = vadd.f32 %v1985_v51, %v1984_v10 }
 0x35c   : > { %v1698_v37 = vadd.f32 %v1986_v12, %v3565_v34  ;;  %v1987_v35 = vpop.f32.mrb[74].mxu1 }
 0x35d   : > { %v1988_v9 = vpop.f32.mrb[75].mxu1 }
 0x35e   : > { %1728 = vst [vmem:[%s3568_s26 + $0x60] sm:$0xff] %v1698_v37  ;;  %v1989_v7 = vadd.f32 %v1988_v9, %v1987_v35 }
 0x360   : > { %v1703_v55 = vadd.f32 %v1989_v7, %v3565_v34  ;;  %v1990_v56 = vpop.f32.mrb[76].mxu1 }
 0x361   : > { %v1991_v39 = vpop.f32.mrb[77].mxu1 }
 0x362   : > { %1729 = vst [vmem:[%s3568_s26 + $0x68] sm:$0xff] %v1703_v55  ;;  %v1992_v24 = vadd.f32 %v1991_v39, %v1990_v56 }
 0x364   : > { %v1708_v40 = vadd.f32 %v1992_v24, %v3565_v34  ;;  %v1993_v48 = vpop.f32.mrb[78].mxu1 }
 0x365   : > { %v1994_v11 = vpop.f32.mrb[79].mxu1 }
 0x366   : > { %1730 = vst [vmem:[%s3568_s26 + $0x70] sm:$0xff] %v1708_v40  ;;  %v1995_v23 = vadd.f32 %v1994_v11, %v1993_v48 }
 0x368   : > { %v1713_v27 = vadd.f32 %v1995_v23, %v3565_v34 }
 0x36a   : > { %1731 = vst [vmem:[%s3568_s26 + $0x78] sm:$0xff] %v1713_v27 }
 0x36b   : > { %2822 = shalt.err (!%p2819_p12)
}
 0x36c   : > { %s2823_s6 = scalar_lea.hbm %s3604_s17, 2048  ;;  %s2827_s7 = scalar_lea.hbm %s3656_s5, 8192 }
 0x36d   : > { %p2824_p0 = scmp.ne.s32.totalorder %s3604_s17, %s2823_s6  ;;  %p2828_p11 = scmp.lt.u32.totalorder %s3604_s17, %s3656_s5 }
 0x36e   : > { %p2829_p1 = scmp.lt.u32.totalorder %s2827_s7, %s2823_s6  ;;  %p2831_p4 = scmp.lt.u32.totalorder %s2823_s6, %s3604_s17 }
 0x36f   : > { %p2825_p5 = pnand %p2824_p0, %p3088_p6 }
 0x370   : > { %p2830_p2 = por %p2829_p1, %p2828_p11 }
 0x371   : > { %p2826_p10 = pneg %p2825_p5 }
 0x372   : > { %p2832_p8 = por %p2831_p4, %p2830_p2 }
 0x374   : > { %p2833_p13 = pnand %p2832_p8, %p2826_p10 }
 0x376   : > { %2836 = shalt.err (!%p2833_p13)
}
 0x377   : > { %s2897_s9 = smov 128   ;;  %s2898_s27 = smov 8  }
 0x378   : > { %2462 = dma.vmem_to_hbm [thread:$0]  (%p3088_p6), %s3606_s11, 2048, %s3604_s17, %s1733_s30, %s2897_s9, %s2897_s9, %s2898_s27  }
 0x379 PF: > { %p2494_p3 = scmp.ge.s32.totalorder %s2883_s21, 2  ;;  %s1761_s13 = sand.u32 1, %s2871_s18  }
 0x37a   : > { %p3674_p7 = scmp.ne.s32.totalorder %s3661_s25, 0  ;;  %s1762_s8 = scalar_lea.sflag [#allocation4], %s1761_s13 }
 0x37c   : > { %p2482_p9 = pnand %p2494_p3, %p3674_p7 }
 0x37e   : > { %2866 = dma.done.wait (!%p2482_p9), %s1762_s8, 2048  }
 0x37f   : > { %2868 = vsyncadd (!%p2482_p9), %s1762_s8, 4294965248  ;;  %p20_p12 = scmp.ge.s32.totalorder %s3075_s12, 6   ;;  %s3675_s18 = smov %s2875_s19 }
 0x380   : > { %s3676_s19 = smov %s2879_s20  ;;  %s3677_s20 = smov %s3084_s15 }
 0x381   : > { %s3678_s21 = smov %s3075_s12  ;;  %22 = sbr.rel (!%p20_p12) target bundleno = 7 (0x7), region = 101 }
 0x388   :  { %1767 = vsyncpa [#allocation3], 1 }
 0x389   :  { %1769 = vsyncpa [#allocation3 + $0x1], 1 }
 0x38a   :  { %1770 = vsyncpa [#allocation6], 1 }
 0x38b   :  { %1771 = vsyncpa [#allocation9], 1 }
 0x38c   :  { %1772 = vsyncpa [#allocation4], 1 }
 0x38d   :  { %1774 = vsyncpa [#allocation4 + $0x1], 1 }

</bundles_post_ra>
